<compile_context>
chip_gen: v7x
topology: tpu7x:2x2x1
jax: 0.10.0
libtpu: 0.0.40
codegen_flags: <defaults>
</compile_context>

<pallas_src>
import functools

import numpy as np
import jax
import jax.numpy as jnp
from jax.experimental import pallas as pl
from jax.experimental.pallas import tpu as pltpu

LANE = 128
SUBLANE = 8


def _round_up(n, m):
    return ((n + m - 1) // m) * m


def _pad_to_lane(n):
    return _round_up(max(n, 1), LANE)


def _vmem_limit_bytes():
    """Scoped-VMEM limit: ~100 MiB on 128-MiB parts (v5e/v6e), ~48 MiB on v7x."""
    cap = 64 * 1024 * 1024
    try:
        cap = pltpu.get_tpu_info().vmem_capacity_bytes
    except Exception:
        pass
    return int(min(cap - 16 * 1024 * 1024, 100 * 1024 * 1024))


def _pick_time_tile(T, halos, max_tile=1024):
    """Largest time tile that divides T, is a multiple of 8, and is >= every
    level's 8-rounded halo (so the aligned tail carry never overlaps)."""
    a_max = max([_round_up(h, SUBLANE) for h in halos if h > 0] + [SUBLANE])
    if T <= max_tile:
        return T
    for tt in range(max_tile, 0, -1):
        if T % tt == 0 and tt % SUBLANE == 0 and tt >= a_max:
            return tt
    return T  # single tile over the whole sequence (no carry needed)


# ----------------------------------------------------------------------------
# Fused multi-level TemporalBlock kernel (optionally with the final Linear)
# ----------------------------------------------------------------------------
def _fused_tcn_kernel(*refs, levels, TT, has_linear, do_carry):
    """One (batch, time_tile) grid cell for a group of consecutive levels.

    refs layout:
      x_ref (1, TT, Cin0_p)
      per level: w1 (K,Cin_p,Cmid_p) bf16, b1 (1,Cmid_p) f32,
                 w2 (K,Cmid_p,Cmid_p) bf16, b2 (1,Cmid_p) f32,
                 [wd (Cin_p,Cmid_p) bf16, bd (1,Cmid_p) f32]
      [wl (Clast_p, Cout_p) bf16, bl (1, Cout_p) f32]
      o_ref (1, TT, Cout_p)
      per level: xa (A+TT, Cin_p) f32, ya (A+TT, Cmid_p) f32   (history scratch)
    """
    it = iter(refs)
    x_ref = next(it)
    weights = []
    for lv in levels:
        w1, b1, w2, b2 = next(it), next(it), next(it), next(it)
        wd = bd = None
        if lv["has_down"]:
            wd, bd = next(it), next(it)
        weights.append((w1, b1, w2, b2, wd, bd))
    wl = bl = None
    if has_linear:
        wl, bl = next(it), next(it)
    o_ref = next(it)
    hist = [(next(it), next(it)) for _ in levels]
    assert not list(it)

    jt = pl.program_id(1)
    is_first = jt == 0

    h = x_ref[0]                                    # (TT, Cin0_p) float32
    for lv, (w1, b1, w2, b2, wd, bd), (xa, ya) in zip(levels, weights, hist):
        K, d, halo, A = lv["K"], lv["d"], lv["halo"], lv["A"]
        x_in = h
        x_bf = x_in.astype(jnp.bfloat16)

        if halo > 0:
            @pl.when(is_first)
            def _init(xa=xa, ya=ya, A=A):
                # Causal left padding == zero history at the first time tile.
                xa[pl.ds(0, A), :] = jnp.zeros((A, xa.shape[1]), xa.dtype)
                ya[pl.ds(0, A), :] = jnp.zeros((A, ya.shape[1]), ya.dtype)
            xa[pl.ds(A, TT), :] = x_in              # sublane-aligned store

        # conv1 (dilated, causal): K accumulating dots; tap K-1 == x (in-reg).
        acc = jnp.dot(x_bf, w1[K - 1], preferred_element_type=jnp.float32)
        for k in range(K - 1):
            tap = xa[pl.ds(A - halo + k * d, TT), :].astype(jnp.bfloat16)
            acc = acc + jnp.dot(tap, w1[k], preferred_element_type=jnp.float32)
        y1 = jnp.maximum(acc + b1[...], 0.0)
        # TODO(synk): Dropout after each ReLU is identity (inference forward).

        y1_bf = y1.astype(jnp.bfloat16)
        if halo > 0:
            ya[pl.ds(A, TT), :] = y1                # sublane-aligned store

        # conv2 (dilated, causal): same pattern, tap K-1 == y1 (in-reg).
        acc = jnp.dot(y1_bf, w2[K - 1], preferred_element_type=jnp.float32)
        for k in range(K - 1):
            tap = ya[pl.ds(A - halo + k * d, TT), :].astype(jnp.bfloat16)
            acc = acc + jnp.dot(tap, w2[k], preferred_element_type=jnp.float32)
        y2 = jnp.maximum(acc + b2[...], 0.0)

        # residual (identity or fused 1x1 downsample) + final ReLU
        if lv["has_down"]:
            res = jnp.dot(x_bf, wd[...], preferred_element_type=jnp.float32) + bd[...]
        else:
            res = x_in
        h = jnp.maximum(y2 + res, 0.0)

    # Carry the causal history for the next time tile (aligned 8k-row copy;
    # TT >= A is guaranteed by _pick_time_tile whenever there is >1 tile).
    if do_carry:
        @pl.when(jt + 1 < pl.num_programs(1))
        def _carry():
            for lv, (xa, ya) in zip(levels, hist):
                if lv["halo"] > 0:
                    A = lv["A"]
                    xa[pl.ds(0, A), :] = xa[pl.ds(TT, A), :]
                    ya[pl.ds(0, A), :] = ya[pl.ds(TT, A), :]

    # (last group only) fused output linear layer
    if has_linear:
        h = jnp.dot(h.astype(jnp.bfloat16), wl[...],
                    preferred_element_type=jnp.float32) + bl[...]

    o_ref[0] = h.astype(o_ref.dtype)


def _fused_group_call(x, levels, linear, *, TT, vmem_limit):
    """Run a group of consecutive TemporalBlocks (+ optional final Linear) in
    a single pallas_call. x: (B, T, Cin_p) f32 -> (B, T, Cout_p) f32."""
    B, T, cin0_p = x.shape
    assert T % TT == 0
    nT = T // TT

    in_arrays = [x]
    in_specs = [pl.BlockSpec((1, TT, cin0_p), lambda b, j: (b, j, 0))]
    lvl_cfgs = []
    scratch_shapes = []
    for lv in levels:
        in_arrays += [lv["w1"], lv["b1"], lv["w2"], lv["b2"]]
        in_specs += [
            pl.BlockSpec(lv["w1"].shape, lambda b, j: (0, 0, 0)),
            pl.BlockSpec(lv["b1"].shape, lambda b, j: (0, 0)),
            pl.BlockSpec(lv["w2"].shape, lambda b, j: (0, 0, 0)),
            pl.BlockSpec(lv["b2"].shape, lambda b, j: (0, 0)),
        ]
        if lv["wd"] is not None:
            in_arrays += [lv["wd"], lv["bd"]]
            in_specs += [
                pl.BlockSpec(lv["wd"].shape, lambda b, j: (0, 0)),
                pl.BlockSpec(lv["bd"].shape, lambda b, j: (0, 0)),
            ]
        scratch_shapes += [
            pltpu.VMEM((lv["A"] + TT, lv["cin_p"]), jnp.float32),
            pltpu.VMEM((lv["A"] + TT, lv["cmid_p"]), jnp.float32),
        ]
        lvl_cfgs.append(dict(K=lv["K"], d=lv["dilation"], halo=lv["halo"],
                             A=lv["A"], has_down=lv["wd"] is not None))

    has_linear = linear is not None
    if has_linear:
        wl, bl = linear
        in_arrays += [wl, bl]
        in_specs += [pl.BlockSpec(wl.shape, lambda b, j: (0, 0)),
                     pl.BlockSpec(bl.shape, lambda b, j: (0, 0))]
        cout_p = wl.shape[1]
    else:
        cout_p = levels[-1]["cmid_p"]

    kernel = functools.partial(
        _fused_tcn_kernel, levels=lvl_cfgs, TT=TT,
        has_linear=has_linear, do_carry=(nT > 1),
    )
    return pl.pallas_call(
        kernel,
        out_shape=jax.ShapeDtypeStruct((B, T, cout_p), jnp.float32),
        grid=(B, nT),
        in_specs=in_specs,
        out_specs=pl.BlockSpec((1, TT, cout_p), lambda b, j: (b, j, 0)),
        scratch_shapes=scratch_shapes,
        compiler_params=pltpu.CompilerParams(
            # Time (axis 1) MUST remain innermost and sequential: the history
            # scratch carries causal state across time tiles per batch element.
            dimension_semantics=("parallel", "arbitrary"),
            vmem_limit_bytes=vmem_limit,
        ),
    )(*in_arrays)


def _group_levels(levels, TT, budget):
    """Greedy grouping of consecutive levels so each group's resident weights
    (double-buffered, bf16) + history scratch fit the VMEM budget."""
    max_cp = max(max(lv["cin_p"], lv["cmid_p"]) for lv in levels)
    base = 8 * TT * max_cp * 4  # double-buffered in/out activation tiles

    def level_bytes(lv):
        wb = 2 * (lv["w1"].size + lv["w2"].size)          # bf16 bytes
        if lv["wd"] is not None:
            wb += 2 * lv["wd"].size
        wb *= 2                                           # pipeline double-buffer
        sb = 4 * (lv["A"] + TT) * (lv["cin_p"] + lv["cmid_p"])
        return wb + sb

    groups, cur, used = [], [], base
    for lv in levels:
        lb = level_bytes(lv)
        if cur and used + lb > budget:
            groups.append(cur)
            cur, used = [], base
        cur.append(lv)
        used += lb
    groups.append(cur)
    return groups


# ----------------------------------------------------------------------------
# Parameter construction (deterministic synthetic init, PyTorch TCN shapes,
# stored padded to 128 lanes and pre-packed as (K, Cin_p, Cout_p) bf16).
# ----------------------------------------------------------------------------
def init_tcn_params(key, input_size, output_size, num_channels, kernel_size):
    params = {"levels": [], "output_size": output_size}
    in_ch = input_size
    for i, out_ch in enumerate(num_channels):
        key, k1, k2, k3, k4, k5 = jax.random.split(key, 6)
        cin_p, cmid_p = _pad_to_lane(in_ch), _pad_to_lane(out_ch)
        dilation = 2 ** i
        halo = (kernel_size - 1) * dilation
        A = max(SUBLANE, _round_up(halo, SUBLANE))
        # PyTorch TemporalBlock: conv weights ~ N(0, 0.01); weight_norm is a
        # reparameterization only, so the effective weight is used directly.
        w1 = 0.01 * jax.random.normal(k1, (kernel_size, in_ch, out_ch), jnp.float32)
        w2 = 0.01 * jax.random.normal(k2, (kernel_size, out_ch, out_ch), jnp.float32)
        b1 = 0.01 * jax.random.normal(k4, (out_ch,), jnp.float32)
        b2 = 0.01 * jax.random.normal(k5, (out_ch,), jnp.float32)
        w1p = (jnp.zeros((kernel_size, cin_p, cmid_p), jnp.float32)
               .at[:, :in_ch, :out_ch].set(w1).astype(jnp.bfloat16))
        w2p = (jnp.zeros((kernel_size, cmid_p, cmid_p), jnp.float32)
               .at[:, :out_ch, :out_ch].set(w2).astype(jnp.bfloat16))
        b1p = jnp.zeros((1, cmid_p), jnp.float32).at[0, :out_ch].set(b1)
        b2p = jnp.zeros((1, cmid_p), jnp.float32).at[0, :out_ch].set(b2)
        if in_ch != out_ch:
            wd = 0.01 * jax.random.normal(k3, (in_ch, out_ch), jnp.float32)
            wdp = (jnp.zeros((cin_p, cmid_p), jnp.float32)
                   .at[:in_ch, :out_ch].set(wd).astype(jnp.bfloat16))
            bdp = jnp.zeros((1, cmid_p), jnp.float32)
        else:
            wdp, bdp = None, None
        params["levels"].append(dict(
            w1=w1p, b1=b1p, w2=w2p, b2=b2p, wd=wdp, bd=bdp,
            K=kernel_size, dilation=dilation, halo=halo, A=A,
            cin_p=cin_p, cmid_p=cmid_p))
        in_ch = out_ch
    key, kl, kb = jax.random.split(key, 3)
    cl_in_p, cl_out_p = _pad_to_lane(num_channels[-1]), _pad_to_lane(output_size)
    wl = 0.1 * jax.random.normal(kl, (num_channels[-1], output_size), jnp.float32)
    bl = 0.1 * jax.random.normal(kb, (output_size,), jnp.float32)
    params["wl"] = (jnp.zeros((cl_in_p, cl_out_p), jnp.float32)
                    .at[:num_channels[-1], :output_size].set(wl).astype(jnp.bfloat16))
    params["bl"] = jnp.zeros((1, cl_out_p), jnp.float32).at[0, :output_size].set(bl)
    return params


# ----------------------------------------------------------------------------
# Full TCN forward (channels-last NTC layout == transpose(1,2)...transpose(1,2))
# ----------------------------------------------------------------------------
def tcn_forward(x, params, *, max_time_tile=1024):
    """x: (B, T, input_size) f32 -> (B, T, output_size) f32.
    The PyTorch .double() cast is done on host (see __main__)."""
    B, T, cin = x.shape
    cin_p = params["levels"][0]["cin_p"]
    h = jnp.pad(x, ((0, 0), (0, 0), (0, cin_p - cin))) if cin_p != cin else x
    # TODO(synk): for channel counts << 128 a (C, T) time-on-lanes layout would
    # avoid most lane padding; kept channels-last for generality.

    halos = [lv["halo"] for lv in params["levels"]]
    TT = _pick_time_tile(T, halos, max_time_tile)
    vmem_limit = _vmem_limit_bytes()
    groups = _group_levels(params["levels"], TT, budget=int(vmem_limit * 0.8))

    for gi, group in enumerate(groups):
        is_last = gi == len(groups) - 1
        h = _fused_group_call(
            h, group,
            (params["wl"], params["bl"]) if is_last else None,
            TT=TT, vmem_limit=vmem_limit)
    return h[:, :, : params["output_size"]]


# Pure-JAX f32 reference (same padded weights) for validation.
def tcn_reference(x, params):
    cin_p = params["levels"][0]["cin_p"]
    h = jnp.pad(x, ((0, 0), (0, 0), (0, cin_p - x.shape[-1])))
    for lv in params["levels"]:
        K, d, halo = lv["K"], lv["dilation"], lv["halo"]
        T = h.shape[1]
        w1 = lv["w1"].astype(jnp.float32)
        w2 = lv["w2"].astype(jnp.float32)
        hp = jnp.pad(h, ((0, 0), (halo, 0), (0, 0)))
        y1 = sum(jnp.einsum("btc,cd->btd", hp[:, k * d:k * d + T, :], w1[k])
                 for k in range(K)) + lv["b1"]
        y1 = jnp.maximum(y1, 0.0)
        y1p = jnp.pad(y1, ((0, 0), (halo, 0), (0, 0)))
        y2 = sum(jnp.einsum("btc,cd->btd", y1p[:, k * d:k * d + T, :], w2[k])
                 for k in range(K)) + lv["b2"]
        y2 = jnp.maximum(y2, 0.0)
        if lv["wd"] is not None:
            res = jnp.einsum("btc,cd->btd", h, lv["wd"].astype(jnp.float32)) + lv["bd"]
        else:
            res = h
        h = jnp.maximum(y2 + res, 0.0)
    out = jnp.einsum("btc,cd->btd", h, params["wl"].astype(jnp.float32)) + params["bl"]
    return out[:, :, : params["output_size"]]


# ----------------------------------------------------------------------------
if __name__ == "__main__":
    # Small hyperparameters consistent with TCN(input_size, output_size,
    # num_channels, kernel_size, dropout).
    input_size = 4
    output_size = 3
    num_channels = [8, 16]
    kernel_size = 2
    batch, seq_len = 2, 16

    key = jax.random.PRNGKey(0)
    key, kx = jax.random.split(key)
    x = jax.random.normal(kx, (batch, seq_len, input_size), jnp.float32)

    params = init_tcn_params(key, input_size, output_size, num_channels, kernel_size)

    out = jax.block_until_ready(tcn_forward(x, params))
    ref = jax.block_until_ready(tcn_reference(x, params))

    assert out.shape == (batch, seq_len, output_size)
    np.testing.assert_allclose(np.asarray(out), np.asarray(ref), rtol=2e-2, atol=2e-2)

    # The PyTorch forward's final .double(): cast on host (f64 is software-
    # emulated on TPU, so it is kept off-device).
    out64 = np.asarray(out, dtype=np.float64)
    assert out64.dtype == np.float64

    print("KERNEL_OK")
</pallas_src>

<mosaic_0001>
module attributes {stable_mosaic.version = 11 : i64} {
  func.func @_fused_tcn_kernel(%arg0: i32, %arg1: i32, %arg2: memref<1x16x128xf32, #tpu.memory_space<vmem>>, %arg3: memref<2x128x128xbf16, #tpu.memory_space<vmem>>, %arg4: memref<1x128xf32, #tpu.memory_space<vmem>>, %arg5: memref<2x128x128xbf16, #tpu.memory_space<vmem>>, %arg6: memref<1x128xf32, #tpu.memory_space<vmem>>, %arg7: memref<128x128xbf16, #tpu.memory_space<vmem>>, %arg8: memref<1x128xf32, #tpu.memory_space<vmem>>, %arg9: memref<2x128x128xbf16, #tpu.memory_space<vmem>>, %arg10: memref<1x128xf32, #tpu.memory_space<vmem>>, %arg11: memref<2x128x128xbf16, #tpu.memory_space<vmem>>, %arg12: memref<1x128xf32, #tpu.memory_space<vmem>>, %arg13: memref<128x128xbf16, #tpu.memory_space<vmem>>, %arg14: memref<1x128xf32, #tpu.memory_space<vmem>>, %arg15: memref<128x128xbf16, #tpu.memory_space<vmem>>, %arg16: memref<1x128xf32, #tpu.memory_space<vmem>>, %arg17: memref<1x16x128xf32, #tpu.memory_space<vmem>>, %arg18: memref<24x128xf32, #tpu.memory_space<vmem>>, %arg19: memref<24x128xf32, #tpu.memory_space<vmem>>, %arg20: memref<24x128xf32, #tpu.memory_space<vmem>>, %arg21: memref<24x128xf32, #tpu.memory_space<vmem>>) attributes {dimension_semantics = [#tpu.dimension_semantics<parallel>, #tpu.dimension_semantics<arbitrary>], iteration_bounds = array<i64: 2, 1>, scalar_prefetch = 0 : i64, scratch_operands = 4 : i64, tpu.core_type = #tpu.core_type<tc>, window_params = [{transform_indices = @transform_0, window_bounds = array<i64: 1, 16, 128>}, {pipeline_mode = #tpu.pipeline_mode<synchronous>, transform_indices = @transform_1, window_bounds = array<i64: 2, 128, 128>}, {pipeline_mode = #tpu.pipeline_mode<synchronous>, transform_indices = @transform_2, window_bounds = array<i64: 1, 128>}, {pipeline_mode = #tpu.pipeline_mode<synchronous>, transform_indices = @transform_3, window_bounds = array<i64: 2, 128, 128>}, {pipeline_mode = #tpu.pipeline_mode<synchronous>, transform_indices = @transform_4, window_bounds = array<i64: 1, 128>}, {pipeline_mode = #tpu.pipeline_mode<synchronous>, transform_indices = @transform_5, window_bounds = array<i64: 128, 128>}, {pipeline_mode = #tpu.pipeline_mode<synchronous>, transform_indices = @transform_6, window_bounds = array<i64: 1, 128>}, {pipeline_mode = #tpu.pipeline_mode<synchronous>, transform_indices = @transform_7, window_bounds = array<i64: 2, 128, 128>}, {pipeline_mode = #tpu.pipeline_mode<synchronous>, transform_indices = @transform_8, window_bounds = array<i64: 1, 128>}, {pipeline_mode = #tpu.pipeline_mode<synchronous>, transform_indices = @transform_9, window_bounds = array<i64: 2, 128, 128>}, {pipeline_mode = #tpu.pipeline_mode<synchronous>, transform_indices = @transform_10, window_bounds = array<i64: 1, 128>}, {pipeline_mode = #tpu.pipeline_mode<synchronous>, transform_indices = @transform_11, window_bounds = array<i64: 128, 128>}, {pipeline_mode = #tpu.pipeline_mode<synchronous>, transform_indices = @transform_12, window_bounds = array<i64: 1, 128>}, {pipeline_mode = #tpu.pipeline_mode<synchronous>, transform_indices = @transform_13, window_bounds = array<i64: 128, 128>}, {pipeline_mode = #tpu.pipeline_mode<synchronous>, transform_indices = @transform_14, window_bounds = array<i64: 1, 128>}, {transform_indices = @transform_15, window_bounds = array<i64: 1, 16, 128>}]} {
    %c0_i32 = arith.constant 0 : i32
    %0 = arith.cmpi eq, %arg1, %c0_i32 : i32
    %c0 = arith.constant 0 : index
    %c0_0 = arith.constant 0 : index
    %c0_1 = arith.constant 0 : index
    %1 = vector.load %arg2[%c0, %c0_0, %c0_1] : memref<1x16x128xf32, #tpu.memory_space<vmem>>, vector<1x16x128xf32>
    %2 = vector.shape_cast %1 : vector<1x16x128xf32> to vector<16x128xf32>
    %3 = arith.truncf %2 : vector<16x128xf32> to vector<16x128xbf16>
    %4 = arith.extui %0 : i1 to i32
    %c0_i32_2 = arith.constant 0 : i32
    %5 = arith.cmpi ne, %4, %c0_i32_2 : i32
    scf.if %5 {
      %cst_79 = arith.constant 0.000000e+00 : f32
      %96 = vector.broadcast %cst_79 : f32 to vector<8x128xf32>
      %c0_80 = arith.constant 0 : index
      %c0_81 = arith.constant 0 : index
      %97 = vector.load %arg18[%c0_80, %c0_81] : memref<24x128xf32, #tpu.memory_space<vmem>>, vector<8x128xf32>
      tpu.vector_store %arg18[%c0_80, %c0_81], %96 {strides = array<i32>} : memref<24x128xf32, #tpu.memory_space<vmem>>, vector<8x128xf32>,
      %cst_82 = arith.constant 0.000000e+00 : f32
      %98 = vector.broadcast %cst_82 : f32 to vector<8x128xf32>
      %c0_83 = arith.constant 0 : index
      %c0_84 = arith.constant 0 : index
      %99 = vector.load %arg19[%c0_83, %c0_84] : memref<24x128xf32, #tpu.memory_space<vmem>>, vector<8x128xf32>
      tpu.vector_store %arg19[%c0_83, %c0_84], %98 {strides = array<i32>} : memref<24x128xf32, #tpu.memory_space<vmem>>, vector<8x128xf32>,
    } else {
    }
    %c8 = arith.constant 8 : index
    %c0_3 = arith.constant 0 : index
    %6 = vector.load %arg18[%c8, %c0_3] : memref<24x128xf32, #tpu.memory_space<vmem>>, vector<16x128xf32>
    tpu.vector_store %arg18[%c8, %c0_3], %2 {strides = array<i32>} : memref<24x128xf32, #tpu.memory_space<vmem>>, vector<16x128xf32>,
    %c1 = arith.constant 1 : index
    %c0_4 = arith.constant 0 : index
    %c0_5 = arith.constant 0 : index
    %7 = vector.load %arg3[%c1, %c0_4, %c0_5] : memref<2x128x128xbf16, #tpu.memory_space<vmem>>, vector<1x128x128xbf16>
    %8 = vector.shape_cast %7 : vector<1x128x128xbf16> to vector<128x128xbf16>
    %cst = arith.constant dense<0.000000e+00> : vector<16x128xf32>
    %9 = tpu.matmul %3, %8, %cst {dimension_numbers = #tpu.dot_dimension_numbers<[1], [0], [0], [1], [0, 0, 1, 1], [], []>} : vector<16x128xbf16>, vector<128x128xbf16>, vector<16x128xf32> -> vector<16x128xf32>
    %c7 = arith.constant 7 : index
    %c0_6 = arith.constant 0 : index
    %10 = vector.load %arg18[%c7, %c0_6] : memref<24x128xf32, #tpu.memory_space<vmem>>, vector<16x128xf32>
    %11 = arith.truncf %10 : vector<16x128xf32> to vector<16x128xbf16>
    %c0_7 = arith.constant 0 : index
    %c0_8 = arith.constant 0 : index
    %c0_9 = arith.constant 0 : index
    %12 = vector.load %arg3[%c0_7, %c0_8, %c0_9] : memref<2x128x128xbf16, #tpu.memory_space<vmem>>, vector<1x128x128xbf16>
    %13 = vector.shape_cast %12 : vector<1x128x128xbf16> to vector<128x128xbf16>
    %cst_10 = arith.constant dense<0.000000e+00> : vector<16x128xf32>
    %14 = tpu.matmul %11, %13, %cst_10 {dimension_numbers = #tpu.dot_dimension_numbers<[1], [0], [0], [1], [0, 0, 1, 1], [], []>} : vector<16x128xbf16>, vector<128x128xbf16>, vector<16x128xf32> -> vector<16x128xf32>
    %15 = arith.addf %9, %14 : vector<16x128xf32>
    %c0_11 = arith.constant 0 : index
    %c0_12 = arith.constant 0 : index
    %16 = vector.load %arg4[%c0_11, %c0_12] : memref<1x128xf32, #tpu.memory_space<vmem>>, vector<1x128xf32>
    %17 = vector.broadcast %16 : vector<1x128xf32> to vector<16x128xf32>
    %18 = arith.addf %15, %17 : vector<16x128xf32>
    %cst_13 = arith.constant 0.000000e+00 : f32
    %19 = vector.broadcast %cst_13 : f32 to vector<16x128xf32>
    %20 = arith.maximumf %18, %19 : vector<16x128xf32>
    %21 = arith.truncf %20 : vector<16x128xf32> to vector<16x128xbf16>
    %c8_14 = arith.constant 8 : index
    %c0_15 = arith.constant 0 : index
    %22 = vector.load %arg19[%c8_14, %c0_15] : memref<24x128xf32, #tpu.memory_space<vmem>>, vector<16x128xf32>
    tpu.vector_store %arg19[%c8_14, %c0_15], %20 {strides = array<i32>} : memref<24x128xf32, #tpu.memory_space<vmem>>, vector<16x128xf32>,
    %c1_16 = arith.constant 1 : index
    %c0_17 = arith.constant 0 : index
    %c0_18 = arith.constant 0 : index
    %23 = vector.load %arg5[%c1_16, %c0_17, %c0_18] : memref<2x128x128xbf16, #tpu.memory_space<vmem>>, vector<1x128x128xbf16>
    %24 = vector.shape_cast %23 : vector<1x128x128xbf16> to vector<128x128xbf16>
    %cst_19 = arith.constant dense<0.000000e+00> : vector<16x128xf32>
    %25 = tpu.matmul %21, %24, %cst_19 {dimension_numbers = #tpu.dot_dimension_numbers<[1], [0], [0], [1], [0, 0, 1, 1], [], []>} : vector<16x128xbf16>, vector<128x128xbf16>, vector<16x128xf32> -> vector<16x128xf32>
    %c7_20 = arith.constant 7 : index
    %c0_21 = arith.constant 0 : index
    %26 = vector.load %arg19[%c7_20, %c0_21] : memref<24x128xf32, #tpu.memory_space<vmem>>, vector<16x128xf32>
    %27 = arith.truncf %26 : vector<16x128xf32> to vector<16x128xbf16>
    %c0_22 = arith.constant 0 : index
    %c0_23 = arith.constant 0 : index
    %c0_24 = arith.constant 0 : index
    %28 = vector.load %arg5[%c0_22, %c0_23, %c0_24] : memref<2x128x128xbf16, #tpu.memory_space<vmem>>, vector<1x128x128xbf16>
    %29 = vector.shape_cast %28 : vector<1x128x128xbf16> to vector<128x128xbf16>
    %cst_25 = arith.constant dense<0.000000e+00> : vector<16x128xf32>
    %30 = tpu.matmul %27, %29, %cst_25 {dimension_numbers = #tpu.dot_dimension_numbers<[1], [0], [0], [1], [0, 0, 1, 1], [], []>} : vector<16x128xbf16>, vector<128x128xbf16>, vector<16x128xf32> -> vector<16x128xf32>
    %31 = arith.addf %25, %30 : vector<16x128xf32>
    %c0_26 = arith.constant 0 : index
    %c0_27 = arith.constant 0 : index
    %32 = vector.load %arg6[%c0_26, %c0_27] : memref<1x128xf32, #tpu.memory_space<vmem>>, vector<1x128xf32>
    %33 = vector.broadcast %32 : vector<1x128xf32> to vector<16x128xf32>
    %34 = arith.addf %31, %33 : vector<16x128xf32>
    %cst_28 = arith.constant 0.000000e+00 : f32
    %35 = vector.broadcast %cst_28 : f32 to vector<16x128xf32>
    %36 = arith.maximumf %34, %35 : vector<16x128xf32>
    %c0_29 = arith.constant 0 : index
    %c0_30 = arith.constant 0 : index
    %37 = vector.load %arg7[%c0_29, %c0_30] : memref<128x128xbf16, #tpu.memory_space<vmem>>, vector<128x128xbf16>
    %cst_31 = arith.constant dense<0.000000e+00> : vector<16x128xf32>
    %38 = tpu.matmul %3, %37, %cst_31 {dimension_numbers = #tpu.dot_dimension_numbers<[1], [0], [0], [1], [0, 0, 1, 1], [], []>} : vector<16x128xbf16>, vector<128x128xbf16>, vector<16x128xf32> -> vector<16x128xf32>
    %c0_32 = arith.constant 0 : index
    %c0_33 = arith.constant 0 : index
    %39 = vector.load %arg8[%c0_32, %c0_33] : memref<1x128xf32, #tpu.memory_space<vmem>>, vector<1x128xf32>
    %40 = vector.broadcast %39 : vector<1x128xf32> to vector<16x128xf32>
    %41 = arith.addf %38, %40 : vector<16x128xf32>
    %42 = arith.addf %36, %41 : vector<16x128xf32>
    %cst_34 = arith.constant 0.000000e+00 : f32
    %43 = vector.broadcast %cst_34 : f32 to vector<16x128xf32>
    %44 = arith.maximumf %42, %43 : vector<16x128xf32>
    %45 = arith.truncf %44 : vector<16x128xf32> to vector<16x128xbf16>
    %46 = arith.extui %0 : i1 to i32
    %c0_i32_35 = arith.constant 0 : i32
    %47 = arith.cmpi ne, %46, %c0_i32_35 : i32
    scf.if %47 {
      %cst_79 = arith.constant 0.000000e+00 : f32
      %96 = vector.broadcast %cst_79 : f32 to vector<8x128xf32>
      %c0_80 = arith.constant 0 : index
      %c0_81 = arith.constant 0 : index
      %97 = vector.load %arg20[%c0_80, %c0_81] : memref<24x128xf32, #tpu.memory_space<vmem>>, vector<8x128xf32>
      tpu.vector_store %arg20[%c0_80, %c0_81], %96 {strides = array<i32>} : memref<24x128xf32, #tpu.memory_space<vmem>>, vector<8x128xf32>,
      %cst_82 = arith.constant 0.000000e+00 : f32
      %98 = vector.broadcast %cst_82 : f32 to vector<8x128xf32>
      %c0_83 = arith.constant 0 : index
      %c0_84 = arith.constant 0 : index
      %99 = vector.load %arg21[%c0_83, %c0_84] : memref<24x128xf32, #tpu.memory_space<vmem>>, vector<8x128xf32>
      tpu.vector_store %arg21[%c0_83, %c0_84], %98 {strides = array<i32>} : memref<24x128xf32, #tpu.memory_space<vmem>>, vector<8x128xf32>,
    } else {
    }
    %c8_36 = arith.constant 8 : index
    %c0_37 = arith.constant 0 : index
    %48 = vector.load %arg20[%c8_36, %c0_37] : memref<24x128xf32, #tpu.memory_space<vmem>>, vector<16x128xf32>
    tpu.vector_store %arg20[%c8_36, %c0_37], %44 {strides = array<i32>} : memref<24x128xf32, #tpu.memory_space<vmem>>, vector<16x128xf32>,
    %c1_38 = arith.constant 1 : index
    %c0_39 = arith.constant 0 : index
    %c0_40 = arith.constant 0 : index
    %49 = vector.load %arg9[%c1_38, %c0_39, %c0_40] : memref<2x128x128xbf16, #tpu.memory_space<vmem>>, vector<1x128x128xbf16>
    %50 = vector.shape_cast %49 : vector<1x128x128xbf16> to vector<128x128xbf16>
    %cst_41 = arith.constant dense<0.000000e+00> : vector<16x128xf32>
    %51 = tpu.matmul %45, %50, %cst_41 {dimension_numbers = #tpu.dot_dimension_numbers<[1], [0], [0], [1], [0, 0, 1, 1], [], []>} : vector<16x128xbf16>, vector<128x128xbf16>, vector<16x128xf32> -> vector<16x128xf32>
    %c6 = arith.constant 6 : index
    %c0_42 = arith.constant 0 : index
    %52 = vector.load %arg20[%c6, %c0_42] : memref<24x128xf32, #tpu.memory_space<vmem>>, vector<16x128xf32>
    %53 = arith.truncf %52 : vector<16x128xf32> to vector<16x128xbf16>
    %c0_43 = arith.constant 0 : index
    %c0_44 = arith.constant 0 : index
    %c0_45 = arith.constant 0 : index
    %54 = vector.load %arg9[%c0_43, %c0_44, %c0_45] : memref<2x128x128xbf16, #tpu.memory_space<vmem>>, vector<1x128x128xbf16>
    %55 = vector.shape_cast %54 : vector<1x128x128xbf16> to vector<128x128xbf16>
    %cst_46 = arith.constant dense<0.000000e+00> : vector<16x128xf32>
    %56 = tpu.matmul %53, %55, %cst_46 {dimension_numbers = #tpu.dot_dimension_numbers<[1], [0], [0], [1], [0, 0, 1, 1], [], []>} : vector<16x128xbf16>, vector<128x128xbf16>, vector<16x128xf32> -> vector<16x128xf32>
    %57 = arith.addf %51, %56 : vector<16x128xf32>
    %c0_47 = arith.constant 0 : index
    %c0_48 = arith.constant 0 : index
    %58 = vector.load %arg10[%c0_47, %c0_48] : memref<1x128xf32, #tpu.memory_space<vmem>>, vector<1x128xf32>
    %59 = vector.broadcast %58 : vector<1x128xf32> to vector<16x128xf32>
    %60 = arith.addf %57, %59 : vector<16x128xf32>
    %cst_49 = arith.constant 0.000000e+00 : f32
    %61 = vector.broadcast %cst_49 : f32 to vector<16x128xf32>
    %62 = arith.maximumf %60, %61 : vector<16x128xf32>
    %63 = arith.truncf %62 : vector<16x128xf32> to vector<16x128xbf16>
    %c8_50 = arith.constant 8 : index
    %c0_51 = arith.constant 0 : index
    %64 = vector.load %arg21[%c8_50, %c0_51] : memref<24x128xf32, #tpu.memory_space<vmem>>, vector<16x128xf32>
    tpu.vector_store %arg21[%c8_50, %c0_51], %62 {strides = array<i32>} : memref<24x128xf32, #tpu.memory_space<vmem>>, vector<16x128xf32>,
    %c1_52 = arith.constant 1 : index
    %c0_53 = arith.constant 0 : index
    %c0_54 = arith.constant 0 : index
    %65 = vector.load %arg11[%c1_52, %c0_53, %c0_54] : memref<2x128x128xbf16, #tpu.memory_space<vmem>>, vector<1x128x128xbf16>
    %66 = vector.shape_cast %65 : vector<1x128x128xbf16> to vector<128x128xbf16>
    %cst_55 = arith.constant dense<0.000000e+00> : vector<16x128xf32>
    %67 = tpu.matmul %63, %66, %cst_55 {dimension_numbers = #tpu.dot_dimension_numbers<[1], [0], [0], [1], [0, 0, 1, 1], [], []>} : vector<16x128xbf16>, vector<128x128xbf16>, vector<16x128xf32> -> vector<16x128xf32>
    %c6_56 = arith.constant 6 : index
    %c0_57 = arith.constant 0 : index
    %68 = vector.load %arg21[%c6_56, %c0_57] : memref<24x128xf32, #tpu.memory_space<vmem>>, vector<16x128xf32>
    %69 = arith.truncf %68 : vector<16x128xf32> to vector<16x128xbf16>
    %c0_58 = arith.constant 0 : index
    %c0_59 = arith.constant 0 : index
    %c0_60 = arith.constant 0 : index
    %70 = vector.load %arg11[%c0_58, %c0_59, %c0_60] : memref<2x128x128xbf16, #tpu.memory_space<vmem>>, vector<1x128x128xbf16>
    %71 = vector.shape_cast %70 : vector<1x128x128xbf16> to vector<128x128xbf16>
    %cst_61 = arith.constant dense<0.000000e+00> : vector<16x128xf32>
    %72 = tpu.matmul %69, %71, %cst_61 {dimension_numbers = #tpu.dot_dimension_numbers<[1], [0], [0], [1], [0, 0, 1, 1], [], []>} : vector<16x128xbf16>, vector<128x128xbf16>, vector<16x128xf32> -> vector<16x128xf32>
    %73 = arith.addf %67, %72 : vector<16x128xf32>
    %c0_62 = arith.constant 0 : index
    %c0_63 = arith.constant 0 : index
    %74 = vector.load %arg12[%c0_62, %c0_63] : memref<1x128xf32, #tpu.memory_space<vmem>>, vector<1x128xf32>
    %75 = vector.broadcast %74 : vector<1x128xf32> to vector<16x128xf32>
    %76 = arith.addf %73, %75 : vector<16x128xf32>
    %cst_64 = arith.constant 0.000000e+00 : f32
    %77 = vector.broadcast %cst_64 : f32 to vector<16x128xf32>
    %78 = arith.maximumf %76, %77 : vector<16x128xf32>
    %c0_65 = arith.constant 0 : index
    %c0_66 = arith.constant 0 : index
    %79 = vector.load %arg13[%c0_65, %c0_66] : memref<128x128xbf16, #tpu.memory_space<vmem>>, vector<128x128xbf16>
    %cst_67 = arith.constant dense<0.000000e+00> : vector<16x128xf32>
    %80 = tpu.matmul %45, %79, %cst_67 {dimension_numbers = #tpu.dot_dimension_numbers<[1], [0], [0], [1], [0, 0, 1, 1], [], []>} : vector<16x128xbf16>, vector<128x128xbf16>, vector<16x128xf32> -> vector<16x128xf32>
    %c0_68 = arith.constant 0 : index
    %c0_69 = arith.constant 0 : index
    %81 = vector.load %arg14[%c0_68, %c0_69] : memref<1x128xf32, #tpu.memory_space<vmem>>, vector<1x128xf32>
    %82 = vector.broadcast %81 : vector<1x128xf32> to vector<16x128xf32>
    %83 = arith.addf %80, %82 : vector<16x128xf32>
    %84 = arith.addf %78, %83 : vector<16x128xf32>
    %cst_70 = arith.constant 0.000000e+00 : f32
    %85 = vector.broadcast %cst_70 : f32 to vector<16x128xf32>
    %86 = arith.maximumf %84, %85 : vector<16x128xf32>
    %87 = arith.truncf %86 : vector<16x128xf32> to vector<16x128xbf16>
    %c0_71 = arith.constant 0 : index
    %c0_72 = arith.constant 0 : index
    %88 = vector.load %arg15[%c0_71, %c0_72] : memref<128x128xbf16, #tpu.memory_space<vmem>>, vector<128x128xbf16>
    %cst_73 = arith.constant dense<0.000000e+00> : vector<16x128xf32>
    %89 = tpu.matmul %87, %88, %cst_73 {dimension_numbers = #tpu.dot_dimension_numbers<[1], [0], [0], [1], [0, 0, 1, 1], [], []>} : vector<16x128xbf16>, vector<128x128xbf16>, vector<16x128xf32> -> vector<16x128xf32>
    %c0_74 = arith.constant 0 : index
    %c0_75 = arith.constant 0 : index
    %90 = vector.load %arg16[%c0_74, %c0_75] : memref<1x128xf32, #tpu.memory_space<vmem>>, vector<1x128xf32>
    %91 = vector.broadcast %90 : vector<1x128xf32> to vector<16x128xf32>
    %92 = arith.addf %89, %91 : vector<16x128xf32>
    %c0_76 = arith.constant 0 : index
    %c0_77 = arith.constant 0 : index
    %c0_78 = arith.constant 0 : index
    %93 = vector.load %arg17[%c0_76, %c0_77, %c0_78] : memref<1x16x128xf32, #tpu.memory_space<vmem>>, vector<1x16x128xf32>
    %94 = vector.shape_cast %93 : vector<1x16x128xf32> to vector<16x128xf32>
    %95 = vector.shape_cast %92 : vector<16x128xf32> to vector<1x16x128xf32>
    tpu.vector_store %arg17[%c0_76, %c0_77, %c0_78], %95 {strides = array<i32>} : memref<1x16x128xf32, #tpu.memory_space<vmem>>, vector<1x16x128xf32>,
    return
  }
  func.func @transform_0(%arg0: i32, %arg1: i32) -> (i32, i32, i32) {
    %c0_i32 = arith.constant 0 : i32
    %c0_i32_0 = arith.constant 0 : i32
    return %arg0, %arg1, %c0_i32 : i32, i32, i32
  }
  func.func @transform_1(%arg0: i32, %arg1: i32) -> (i32, i32, i32) {
    %c0_i32 = arith.constant 0 : i32
    %c0_i32_0 = arith.constant 0 : i32
    %c0_i32_1 = arith.constant 0 : i32
    %c0_i32_2 = arith.constant 0 : i32
    return %c0_i32, %c0_i32_0, %c0_i32_1 : i32, i32, i32
  }
  func.func @transform_2(%arg0: i32, %arg1: i32) -> (i32, i32) {
    %c0_i32 = arith.constant 0 : i32
    %c0_i32_0 = arith.constant 0 : i32
    %c0_i32_1 = arith.constant 0 : i32
    return %c0_i32, %c0_i32_0 : i32, i32
  }
  func.func @transform_3(%arg0: i32, %arg1: i32) -> (i32, i32, i32) {
    %c0_i32 = arith.constant 0 : i32
    %c0_i32_0 = arith.constant 0 : i32
    %c0_i32_1 = arith.constant 0 : i32
    %c0_i32_2 = arith.constant 0 : i32
    return %c0_i32, %c0_i32_0, %c0_i32_1 : i32, i32, i32
  }
  func.func @transform_4(%arg0: i32, %arg1: i32) -> (i32, i32) {
    %c0_i32 = arith.constant 0 : i32
    %c0_i32_0 = arith.constant 0 : i32
    %c0_i32_1 = arith.constant 0 : i32
    return %c0_i32, %c0_i32_0 : i32, i32
  }
  func.func @transform_5(%arg0: i32, %arg1: i32) -> (i32, i32) {
    %c0_i32 = arith.constant 0 : i32
    %c0_i32_0 = arith.constant 0 : i32
    %c0_i32_1 = arith.constant 0 : i32
    return %c0_i32, %c0_i32_0 : i32, i32
  }
  func.func @transform_6(%arg0: i32, %arg1: i32) -> (i32, i32) {
    %c0_i32 = arith.constant 0 : i32
    %c0_i32_0 = arith.constant 0 : i32
    %c0_i32_1 = arith.constant 0 : i32
    return %c0_i32, %c0_i32_0 : i32, i32
  }
  func.func @transform_7(%arg0: i32, %arg1: i32) -> (i32, i32, i32) {
    %c0_i32 = arith.constant 0 : i32
    %c0_i32_0 = arith.constant 0 : i32
    %c0_i32_1 = arith.constant 0 : i32
    %c0_i32_2 = arith.constant 0 : i32
    return %c0_i32, %c0_i32_0, %c0_i32_1 : i32, i32, i32
  }
  func.func @transform_8(%arg0: i32, %arg1: i32) -> (i32, i32) {
    %c0_i32 = arith.constant 0 : i32
    %c0_i32_0 = arith.constant 0 : i32
    %c0_i32_1 = arith.constant 0 : i32
    return %c0_i32, %c0_i32_0 : i32, i32
  }
  func.func @transform_9(%arg0: i32, %arg1: i32) -> (i32, i32, i32) {
    %c0_i32 = arith.constant 0 : i32
    %c0_i32_0 = arith.constant 0 : i32
    %c0_i32_1 = arith.constant 0 : i32
    %c0_i32_2 = arith.constant 0 : i32
    return %c0_i32, %c0_i32_0, %c0_i32_1 : i32, i32, i32
  }
  func.func @transform_10(%arg0: i32, %arg1: i32) -> (i32, i32) {
    %c0_i32 = arith.constant 0 : i32
    %c0_i32_0 = arith.constant 0 : i32
    %c0_i32_1 = arith.constant 0 : i32
    return %c0_i32, %c0_i32_0 : i32, i32
  }
  func.func @transform_11(%arg0: i32, %arg1: i32) -> (i32, i32) {
    %c0_i32 = arith.constant 0 : i32
    %c0_i32_0 = arith.constant 0 : i32
    %c0_i32_1 = arith.constant 0 : i32
    return %c0_i32, %c0_i32_0 : i32, i32
  }
  func.func @transform_12(%arg0: i32, %arg1: i32) -> (i32, i32) {
    %c0_i32 = arith.constant 0 : i32
    %c0_i32_0 = arith.constant 0 : i32
    %c0_i32_1 = arith.constant 0 : i32
    return %c0_i32, %c0_i32_0 : i32, i32
  }
  func.func @transform_13(%arg0: i32, %arg1: i32) -> (i32, i32) {
    %c0_i32 = arith.constant 0 : i32
    %c0_i32_0 = arith.constant 0 : i32
    %c0_i32_1 = arith.constant 0 : i32
    return %c0_i32, %c0_i32_0 : i32, i32
  }
  func.func @transform_14(%arg0: i32, %arg1: i32) -> (i32, i32) {
    %c0_i32 = arith.constant 0 : i32
    %c0_i32_0 = arith.constant 0 : i32
    %c0_i32_1 = arith.constant 0 : i32
    return %c0_i32, %c0_i32_0 : i32, i32
  }
  func.func @transform_15(%arg0: i32, %arg1: i32) -> (i32, i32, i32) {
    %c0_i32 = arith.constant 0 : i32
    %c0_i32_0 = arith.constant 0 : i32
    return %arg0, %arg1, %c0_i32 : i32, i32, i32
  }
}

</mosaic_0001>

<bundles_post_ra>
// kernel: tpu_custom_call.1
= control target key start
LH: loop header
LB: loop body
LE: loop exit
PB: predicated region body
PF: predicated region fallthrough
CT: control target
= control target key end

     0   :  { %s3700_s0 = inlined_call_operand.hbm [shape: f32[2,16,128], index: 0, kind: input, shape index: {}]   ;;  %s3701_s1 = inlined_call_operand.hbm [shape: bf16[2,128,128], index: 1, kind: input, shape index: {}]   ;;  %s3702_s2 = inlined_call_operand.vmem [shape: f32[1,128], index: 2, kind: input, shape index: {}]   ;;  %s3703_s3 = inlined_call_operand.hbm [shape: bf16[2,128,128], index: 3, kind: input, shape index: {}]   ;;  %s3704_s4 = inlined_call_operand.vmem [shape: f32[1,128], index: 4, kind: input, shape index: {}]   ;;  %s3705_s5 = inlined_call_operand.hbm [shape: bf16[128,128], index: 5, kind: input, shape index: {}]   ;;  %s3706_s6 = inlined_call_operand.vmem [shape: f32[1,128], index: 6, kind: input, shape index: {}]   ;;  %s3707_s7 = inlined_call_operand.hbm [shape: bf16[2,128,128], index: 7, kind: input, shape index: {}]   ;;  %s3708_s8 = inlined_call_operand.vmem [shape: f32[1,128], index: 8, kind: input, shape index: {}]   ;;  %s3709_s9 = inlined_call_operand.hbm [shape: bf16[2,128,128], index: 9, kind: input, shape index: {}]   ;;  %s3710_s10 = inlined_call_operand.vmem [shape: f32[1,128], index: 10, kind: input, shape index: {}]   ;;  %s3711_s11 = inlined_call_operand.hbm [shape: bf16[128,128], index: 11, kind: input, shape index: {}]   ;;  %s3712_s12 = inlined_call_operand.vmem [shape: f32[1,128], index: 12, kind: input, shape index: {}]   ;;  %s3713_s13 = inlined_call_operand.hbm [shape: bf16[128,128], index: 13, kind: input, shape index: {}]   ;;  %s3714_s14 = inlined_call_operand.vmem [shape: f32[1,128], index: 14, kind: input, shape index: {}]   ;;  %s3715_s15 = inlined_call_operand.hbm [shape: f32[2,16,128], index: 15, kind: output, shape index: {}]  }
   0x1   :  { %3722 = sst [smem:[#allocation28_spill]] %s3701_s1 }
   0x2   :  { %3723 = sst [smem:[#allocation29_spill]] %s3702_s2 }
   0x3   :  { %3724 = sst [smem:[#allocation30_spill]] %s3704_s4 }
   0x4   :  { %3725 = sst [smem:[#allocation31_spill]] %s3706_s6 }
   0x5   :  { %3726 = sst [smem:[#allocation32_spill]] %s3708_s8 }
   0x6   :  { %3727 = sst [smem:[#allocation33_spill]] %s3710_s10 }
   0x7   :  { %3728 = sst [smem:[#allocation34_spill]] %s3712_s12 }
   0x8   :  { %3729 = sst [smem:[#allocation35_spill]] %s3714_s14 }
   0x9   :  { %3730 = sst [smem:[#allocation36_spill]] %s3715_s15 }
   0xa   :  { %20 = vsyncpa [#allocation7], 0 }
   0xb   :  { %22 = vsyncpa [#allocation7 + $0x1], 0 }
   0xc   :  { %23 = vsyncpa [#allocation10], 0 }
   0xd   :  { %24 = vsyncpa [#allocation13], 0 }
   0xe   :  { %25 = vsyncpa [#allocation16], 0 }
   0xf   :  { %26 = vsyncpa [#allocation19], 0 }
  0x10   :  { %27 = vsyncpa [#allocation8], 0 }
  0x11   :  { %29 = vsyncpa [#allocation8 + $0x1], 0  ;;  %s3176_s18 = smov 0   ;;  %s3178_s19 = smov 0  }
  0x12   :  { %s3180_s20 = smov 0   ;;  %s3182_s21 = smov 0  }
  0x13   :  { %s3184_s22 = smov 0   ;;  %s3186_s23 = smov 0  }
  0x14 LB: > { %3731 = sst [smem:[#allocation27_spill]] %s3069_s21  ;;  %s3716_s24 = sadd.s32 4294967295, %s3077_s23   ;;  %s3077_s23 = sphi %s3186_s23, %s35_s23   ;;  %s3073_s22 = sphi %s3184_s22, %s3762_s22   ;;  %s3069_s21 = sphi %s3182_s21, %s3761_s21   ;;  %s3065_s20 = sphi %s3180_s20, %s3760_s20   ;;  %s3061_s19 = sphi %s3178_s19, %s3759_s19   ;;  %s3057_s18 = sphi %s3176_s18, %s3758_s18  }
  0x15   : > { %p2080_p0 = scmp.ge.s32.totalorder %s3077_s23, 1  ;;  %p3210_p1 = scmp.eq.s32.totalorder %s3716_s24, 0 }
  0x16   : > { %p402_p2 = scmp.lt.s32.totalorder %s3077_s23, 3  ;;  %s3079_s27 = smov [#allocation9]  }
  0x17   : > { %s3732_s25 = scalar_select %p3210_p1, 1, 0 }
  0x18   : > { %p3215_p3 = pnand %p2080_p0, %p402_p2  ;;  %s414_s28 = sshll.u32 %s3079_s27, 4  ;;  %s3219_s28 = int_to_ptr.vmem [resolvable:$true] %s414_s28 }
  0x19   : > { %s3080_s30 = smov [#allocation12]   ;;  %s3081_s17 = smov [#allocation15]  }
  0x1a   : > { %s3733_s26 = scalar_select %p3215_p3, 1, 0 }
  0x1b   : > { %p2555_p4 = pneg %p3215_p3  ;;  %s446_s16 = sshll.u32 %s3080_s30, 4  ;;  %s3230_s16 = int_to_ptr.vmem [resolvable:$true] %s446_s16 }
  0x1c   : > { %s3232_s24 = sshll.u32 %s3081_s17, 4  ;;  %s3735_s1 = sld [smem:[#allocation28_spill]]  ;;  %s479_s24 = int_to_ptr.vmem [resolvable:$true] %s3232_s24 }
  0x1d   : > { %p3226_p6 = pnand %p2555_p4, %p3210_p1 }
  0x1f   : > { %p3242_p8 = pneg %p3226_p6 }
  0x22   : > { %s2753_s14 = scalar_lea.hbm %s3735_s1, 2048 }
  0x23   : > { %p2754_p7 = scmp.ne.s32.totalorder %s3735_s1, %s2753_s14  ;;  %p2760_p11 = scmp.lt.u32.totalorder %s2753_s14, %s3735_s1 }
  0x25   : > { %p2756_p9 = pnand %p3242_p8, %p2754_p7 }
  0x27   : > { %p2757_p10 = pneg %p2756_p9 }
  0x29   : > { %p2762_p12 = pnand %p2760_p11, %p2757_p10 }
  0x2b   : > { %2765 = shalt.err (!%p2762_p12)
}
  0x2c   : > { %s2766_s12 = scalar_lea.vmem %s3219_s28, 2048  ;;  %p2774_p4 = scmp.lt.s32.totalorder %s3219_s28, %s3219_s28 }
  0x2d   : > { %p2767_p13 = scmp.ne.s32.totalorder %s3219_s28, %s2766_s12  ;;  %p2775_p5 = scmp.lt.s32.totalorder %s2766_s12, %s2766_s12 }
  0x2f   : > { %p2769_p0 = pnand %p2767_p13, %p3242_p8  ;;  %p2776_p7 = por %p2775_p5, %p2774_p4 }
  0x31   : > { %p2770_p2 = pneg %p2769_p0 }
  0x33   : > { %p2777_p9 = pnand %p2776_p7, %p2770_p2 }
  0x35   : > { %2780 = shalt.err (!%p2777_p9)
}
  0x36   : > { %s3082_s15 = smov 64   ;;  %s3083_s14 = smov 4  }
  0x37   : > { %2558 = dma.hbm_to_vmem [thread:$0]  (!%p3226_p6), %s3735_s1, 2048, %s3219_s28, [#allocation10], %s3082_s15, %s3082_s15, %s3083_s14  }
  0x38   : > { %s2781_s12 = scalar_lea.hbm %s3705_s5, 1024 }
  0x39   : > { %p2782_p5 = scmp.ne.s32.totalorder %s3705_s5, %s2781_s12  ;;  %p2788_p12 = scmp.lt.u32.totalorder %s2781_s12, %s3705_s5 }
  0x3b   : > { %p2784_p10 = pnand %p2782_p5, %p3242_p8 }
  0x3d   : > { %p2785_p11 = pneg %p2784_p10 }
  0x3f   : > { %p2790_p13 = pnand %p2788_p12, %p2785_p11 }
  0x41   : > { %2793 = shalt.err (!%p2790_p13)
}
  0x42   : > { %s2794_s28 = scalar_lea.vmem %s3230_s16, 1024  ;;  %p2802_p7 = scmp.lt.s32.totalorder %s3230_s16, %s3230_s16 }
  0x43   : > { %p2795_p0 = scmp.ne.s32.totalorder %s3230_s16, %s2794_s28  ;;  %p2803_p9 = scmp.lt.s32.totalorder %s2794_s28, %s2794_s28 }
  0x45   : > { %p2797_p2 = pnand %p2795_p0, %p3242_p8  ;;  %p2804_p5 = por %p2803_p9, %p2802_p7 }
  0x47   : > { %p2798_p4 = pneg %p2797_p2 }
  0x49   : > { %p2805_p10 = pnand %p2804_p5, %p2798_p4 }
  0x4b   : > { %2808 = shalt.err (!%p2805_p10)
}
  0x4c   : > { %2564 = dma.hbm_to_vmem [thread:$0]  (!%p3226_p6), %s3705_s5, 1024, %s3230_s16, [#allocation13], %s3082_s15, %s3082_s15, %s3083_s14  }
  0x4d   : > { %s2809_s21 = scalar_lea.hbm %s3709_s9, 2048 }
  0x4e   : > { %p2810_p11 = scmp.ne.s32.totalorder %s3709_s9, %s2809_s21  ;;  %p2816_p0 = scmp.lt.u32.totalorder %s2809_s21, %s3709_s9 }
  0x50   : > { %p2812_p12 = pnand %p2810_p11, %p3242_p8 }
  0x52   : > { %p2813_p13 = pneg %p2812_p12 }
  0x54   : > { %p2818_p2 = pnand %p2816_p0, %p2813_p13 }
  0x56   : > { %2821 = shalt.err (!%p2818_p2)
}
  0x57   : > { %s2822_s28 = scalar_lea.vmem %s479_s24, 2048  ;;  %p2830_p5 = scmp.lt.s32.totalorder %s479_s24, %s479_s24 }
  0x58   : > { %p2823_p4 = scmp.ne.s32.totalorder %s479_s24, %s2822_s28  ;;  %p2831_p10 = scmp.lt.s32.totalorder %s2822_s28, %s2822_s28 }
  0x5a   : > { %p2825_p7 = pnand %p2823_p4, %p3242_p8  ;;  %p2832_p3 = por %p2831_p10, %p2830_p5 }
  0x5c   : > { %p2826_p9 = pneg %p2825_p7 }
  0x5e   : > { %p2833_p1 = pnand %p2832_p3, %p2826_p9 }
  0x60   : > { %2836 = shalt.err (!%p2833_p1)
}
  0x61   : > { %2570 = dma.hbm_to_vmem [thread:$0]  (!%p3226_p6), %s3709_s9, 2048, %s479_s24, [#allocation16], %s3082_s15, %s3082_s15, %s3083_s14  }
  0x62   : > { %s3084_s4 = smov [#allocation11]   ;;  %s3085_s8 = smov [#allocation14]  }
  0x63   : > { %s430_s6 = sshll.u32 %s3084_s4, 4  ;;  %s462_s21 = sshll.u32 %s3085_s8, 4  ;;  %s431_s6 = int_to_ptr.vmem [resolvable:$true] %s430_s6  ;;  %s463_s21 = int_to_ptr.vmem [resolvable:$true] %s462_s21 }
  0x64   : > { %s2837_s17 = scalar_lea.hbm %s3703_s3, 2048 }
  0x65   : > { %p2838_p1 = scmp.ne.s32.totalorder %s3703_s3, %s2837_s17  ;;  %p2844_p12 = scmp.lt.u32.totalorder %s2837_s17, %s3703_s3 }
  0x67   : > { %p2840_p3 = pnand %p2838_p1, %p3242_p8 }
  0x69   : > { %p2841_p11 = pneg %p2840_p3 }
  0x6b   : > { %p2846_p13 = pnand %p2844_p12, %p2841_p11 }
  0x6d   : > { %2849 = shalt.err (!%p2846_p13)
}
  0x6e   : > { %s2850_s24 = scalar_lea.vmem %s431_s6, 2048  ;;  %p2858_p7 = scmp.lt.s32.totalorder %s431_s6, %s431_s6 }
  0x6f   : > { %p2851_p0 = scmp.ne.s32.totalorder %s431_s6, %s2850_s24  ;;  %p2859_p9 = scmp.lt.s32.totalorder %s2850_s24, %s2850_s24 }
  0x71   : > { %p2853_p2 = pnand %p2851_p0, %p3242_p8  ;;  %p2860_p5 = por %p2859_p9, %p2858_p7 }
  0x73   : > { %p2854_p4 = pneg %p2853_p2 }
  0x75   : > { %p2861_p10 = pnand %p2860_p5, %p2854_p4 }
  0x77   : > { %2864 = shalt.err (!%p2861_p10)
}
  0x78   : > { %2561 = dma.hbm_to_vmem [thread:$0]  (!%p3226_p6), %s3703_s3, 2048, %s431_s6, [#allocation10], %s3082_s15, %s3082_s15, %s3083_s14  }
  0x79   : > { %s2865_s27 = scalar_lea.hbm %s3707_s7, 2048 }
  0x7a   : > { %p2866_p1 = scmp.ne.s32.totalorder %s3707_s7, %s2865_s27  ;;  %p2872_p12 = scmp.lt.u32.totalorder %s2865_s27, %s3707_s7 }
  0x7c   : > { %p2868_p3 = pnand %p2866_p1, %p3242_p8 }
  0x7e   : > { %p2869_p11 = pneg %p2868_p3 }
  0x80   : > { %p2874_p13 = pnand %p2872_p12, %p2869_p11 }
  0x82   : > { %2877 = shalt.err (!%p2874_p13)
}
  0x83   : > { %s2878_s16 = scalar_lea.vmem %s463_s21, 2048  ;;  %p2886_p7 = scmp.lt.s32.totalorder %s463_s21, %s463_s21 }
  0x84   : > { %p2879_p0 = scmp.ne.s32.totalorder %s463_s21, %s2878_s16  ;;  %p2887_p9 = scmp.lt.s32.totalorder %s2878_s16, %s2878_s16 }
  0x86   : > { %p2881_p2 = pnand %p2879_p0, %p3242_p8  ;;  %p2888_p5 = por %p2887_p9, %p2886_p7 }
  0x88   : > { %p2882_p4 = pneg %p2881_p2 }
  0x8a   : > { %p2889_p10 = pnand %p2888_p5, %p2882_p4 }
  0x8c   : > { %2892 = shalt.err (!%p2889_p10)
}
  0x8d   : > { %2567 = dma.hbm_to_vmem [thread:$0]  (!%p3226_p6), %s3707_s7, 2048, %s463_s21, [#allocation13], %s3082_s15, %s3082_s15, %s3083_s14  }
  0x8e   : > { %s3086_s1 = smov [#allocation17]   ;;  %s3087_s4 = smov [#allocation18]  }
  0x8f   : > { %s494_s2 = sshll.u32 %s3086_s1, 4  ;;  %s510_s8 = sshll.u32 %s3087_s4, 4  ;;  %s495_s2 = int_to_ptr.vmem [resolvable:$true] %s494_s2  ;;  %s511_s8 = int_to_ptr.vmem [resolvable:$true] %s510_s8 }
  0x90   : > { %s2893_s17 = scalar_lea.hbm %s3711_s11, 1024 }
  0x91   : > { %p2894_p1 = scmp.ne.s32.totalorder %s3711_s11, %s2893_s17  ;;  %p2900_p12 = scmp.lt.u32.totalorder %s2893_s17, %s3711_s11 }
  0x93   : > { %p2896_p3 = pnand %p2894_p1, %p3242_p8 }
  0x95   : > { %p2897_p11 = pneg %p2896_p3 }
  0x97   : > { %p2902_p13 = pnand %p2900_p12, %p2897_p11 }
  0x99   : > { %2905 = shalt.err (!%p2902_p13)
}
  0x9a   : > { %s2906_s21 = scalar_lea.vmem %s495_s2, 1024  ;;  %p2914_p7 = scmp.lt.s32.totalorder %s495_s2, %s495_s2 }
  0x9b   : > { %p2907_p0 = scmp.ne.s32.totalorder %s495_s2, %s2906_s21  ;;  %p2915_p9 = scmp.lt.s32.totalorder %s2906_s21, %s2906_s21 }
  0x9d   : > { %p2909_p2 = pnand %p2907_p0, %p3242_p8  ;;  %p2916_p5 = por %p2915_p9, %p2914_p7 }
  0x9f   : > { %p2910_p4 = pneg %p2909_p2 }
  0xa1   : > { %p2917_p10 = pnand %p2916_p5, %p2910_p4 }
  0xa3   : > { %2920 = shalt.err (!%p2917_p10)
}
  0xa4   : > { %2573 = dma.hbm_to_vmem [thread:$0]  (!%p3226_p6), %s3711_s11, 1024, %s495_s2, [#allocation16], %s3082_s15, %s3082_s15, %s3083_s14  }
  0xa5   : > { %s2921_s30 = scalar_lea.hbm %s3713_s13, 1024 }
  0xa6   : > { %p2922_p1 = scmp.ne.s32.totalorder %s3713_s13, %s2921_s30  ;;  %p2928_p12 = scmp.lt.u32.totalorder %s2921_s30, %s3713_s13 }
  0xa8   : > { %p2924_p3 = pnand %p2922_p1, %p3242_p8 }
  0xaa   : > { %p2925_p11 = pneg %p2924_p3 }
  0xac   : > { %p2930_p13 = pnand %p2928_p12, %p2925_p11 }
  0xae   : > { %2933 = shalt.err (!%p2930_p13)
}
  0xaf   : > { %s2934_s6 = scalar_lea.vmem %s511_s8, 1024  ;;  %p2942_p7 = scmp.lt.s32.totalorder %s511_s8, %s511_s8 }
  0xb0   : > { %p2935_p0 = scmp.ne.s32.totalorder %s511_s8, %s2934_s6  ;;  %p2943_p9 = scmp.lt.s32.totalorder %s2934_s6, %s2934_s6 }
  0xb2   : > { %p2937_p2 = pnand %p2935_p0, %p3242_p8  ;;  %p2944_p5 = por %p2943_p9, %p2942_p7 }
  0xb4   : > { %p2938_p4 = pneg %p2937_p2 }
  0xb6   : > { %p2945_p10 = pnand %p2944_p5, %p2938_p4 }
  0xb8   : > { %2948 = shalt.err (!%p2945_p10)
}
  0xb9   : > { %2576 = dma.hbm_to_vmem [thread:$0]  (!%p3226_p6), %s3713_s13, 1024, %s511_s8, [#allocation19], %s3082_s15, %s3082_s15, %s3083_s14  }
  0xba   : > { %s2079_s10 = sadd.s32 4294967294, %s3077_s23   ;;  %s47_s29 = sadd.s32 1, %s3073_s22 }
  0xbb   : > { %s56_s24 = sadd.s32 1, %s3065_s20  ;;  %p49_p8 = scmp.ge.s32.totalorder %s47_s29, 2 }
  0xbc   : > { %p63_p1 = scmp.ne.s32.totalorder %s3065_s20, %s3061_s19  ;;  %p64_p3 = scmp.eq.s32.totalorder %s3077_s23, 0 }
  0xbd   : > { %p69_p11 = scmp.ne.s32.totalorder %s3061_s19, %s3057_s18  ;;  %s3764_s29 = smov (%p49_p8, %s47_s29), 0 }
  0xbe   : > { %p3408_p12 = por %p64_p3, %p63_p1  ;;  %p3738_p13 = scmp.ne.s32.totalorder %s3732_s25, 0 }
  0xbf   : > { %s51_s14 = ssub.s32 %s3073_s22, %s3764_s29  ;;  %s3740_s8 = sadd.s32 4294967295, %s3077_s23  }
  0xc0   : > { %p3414_p6 = por %p3738_p13, %p69_p11  ;;  %p389_p0 = scmp.eq.s32.totalorder %s3740_s8, 1 }
  0xc1   : > { %p54_p2 = scmp.eq.s32.totalorder %s51_s14, 0  ;;  %p395_p4 = scmp.eq.s32.totalorder %s2079_s10, 1 }
  0xc2   : > { %p3422_p7 = por %p389_p0, %p63_p1  ;;  %p2592_p9 = scmp.lt.s32.totalorder %s3077_s23, 2 }
  0xc3   : > { %s3428_s27 = scalar_select %p54_p2, %s3065_s20, %s56_s24  }
  0xc4   : > { %s3741_s4 = scalar_select %p3422_p7, 1, 0 }
  0xc5   : > { %p3430_p5 = por %p395_p4, %p69_p11  ;;  %s527_s17 = sand.u32 1, %s3065_s20  }
  0xc6   : > { %s2089_s12 = sshll.u32 %s527_s17, 4  ;;  %s2202_s28 = sshll.u32 %s3073_s22, 8 }
  0xc7   : > { %s3742_s30 = scalar_select %p3430_p5, 1, 0 }
  0xc8   : > { %s3439_s2 = scalar_lea.hbm %s3700_s0, %s2202_s28  ;;  %s531_s21 = scalar_lea.vmem [#allocation6], %s2089_s12 }
  0xc9   : > { %s540_s10 = sshll.u32 %s531_s21, 4  ;;  %p3445_p10 = pnand %p2592_p9, %p3408_p12  ;;  %s3441_s10 = int_to_ptr.vmem [resolvable:$true] %s540_s10 }
  0xca   : > { %s3449_s14 = scalar_lea.sflag [#allocation7], %s527_s17  ;;  %s2949_s8 = scalar_lea.hbm %s3439_s2, 256 }
  0xcb   : > { %p2950_p8 = scmp.ne.s32.totalorder %s3439_s2, %s2949_s8  ;;  %p2951_p1 = pneg %p3445_p10 }
  0xcc   : > { %s2954_s1 = scalar_lea.hbm %s3700_s0, 512  ;;  %p2955_p12 = scmp.lt.u32.totalorder %s3439_s2, %s3700_s0 }
  0xcd   : > { %p2952_p3 = pnand %p2951_p1, %p2950_p8  ;;  %p2956_p13 = scmp.lt.u32.totalorder %s2954_s1, %s2949_s8 }
  0xce   : > { %p2958_p2 = scmp.lt.u32.totalorder %s2949_s8, %s3439_s2 }
  0xcf   : > { %p2953_p11 = pneg %p2952_p3  ;;  %p2957_p0 = por %p2956_p13, %p2955_p12 }
  0xd1   : > { %p2959_p4 = por %p2958_p2, %p2957_p0 }
  0xd3   : > { %p2960_p9 = pnand %p2959_p4, %p2953_p11 }
  0xd5   : > { %2963 = shalt.err (!%p2960_p9)
}
  0xd6   : > { %s2964_s17 = scalar_lea.vmem %s3441_s10, 256  ;;  %s3088_s21 = smov [#allocation6]  }
  0xd7   : > { %p2965_p8 = scmp.ne.s32.totalorder %s3441_s10, %s2964_s17  ;;  %s2969_s12 = sshll.u32 %s3088_s21, 4  ;;  %s2970_s12 = int_to_ptr.vmem [resolvable:$false] %s2969_s12 }
  0xd8   : > { %s2971_s28 = scalar_lea.vmem %s2970_s12, 512  ;;  %p2972_p7 = scmp.lt.s32.totalorder %s3441_s10, %s2970_s12 }
  0xd9   : > { %p2967_p3 = pnand %p2965_p8, %p2951_p1  ;;  %p2973_p12 = scmp.lt.s32.totalorder %s2971_s28, %s2964_s17 }
  0xdb   : > { %p2968_p5 = pneg %p2967_p3  ;;  %p2974_p13 = por %p2973_p12, %p2972_p7 }
  0xdd   : > { %p2975_p0 = pnand %p2974_p13, %p2968_p5 }
  0xdf   : > { %2978 = shalt.err (!%p2975_p0)
}
  0xe0   : > { %s3089_s8 = smov 128   ;;  %s3090_s1 = smov 8  }
  0xe1   : > { %2580 = dma.hbm_to_vmem [thread:$0]  (!%p3445_p10), %s3439_s2, 256, %s3441_s10, %s3449_s14, %s3089_s8, %s3089_s8, %s3090_s1  }
  0xe2   : > { %p3744_p1 = scmp.ne.s32.totalorder %s3733_s26, 0 }
  0xe3   : > { %s3480_s16 = sand.u32 (!%p3744_p1), 1, %s3061_s19  }
  0xe4   : > { %552 = sbr.rel (%p3744_p1) target bundleno = 1486 (0x5ce), region = 80  ;;  %s2093_s6 = sshll.u32 (!%p3744_p1), %s3480_s16, 4 }
  0xe5   : > { %s555_s17 = scalar_lea.sflag (!%p3744_p1), [#allocation7], %s3480_s16  ;;  %s3486_s21 = scalar_lea.vmem (!%p3744_p1), [#allocation6], %s2093_s6 }
  0xeb   : > { %3032 = dma.done.wait (%p3414_p6), %s555_s17, 256  }
  0xec   : > { %3034 = vsyncadd (%p3414_p6), %s555_s17, 4294967040  ;;  %p3745_p7 = scmp.ne.s32.totalorder %s3732_s25, 0 }
  0xee   : > { %3036 = dma.done.wait (%p3745_p7), [#allocation10], 4096  }
  0xef   : > { %3038 = vsyncadd (%p3745_p7), [#allocation10], 4294963200 }
  0xf0   : > { %3040 = dma.done.wait (%p3745_p7), [#allocation13], 3072  }
  0xf1   : > { %3042 = vsyncadd (%p3745_p7), [#allocation13], 4294964224 }
  0xf2   : > { %3044 = dma.done.wait (%p3745_p7), [#allocation16], 3072  }
  0xf3   : > { %3046 = vsyncadd (%p3745_p7), [#allocation16], 4294964224 }
  0xf4   : > { %3048 = dma.done.wait (%p3745_p7), [#allocation19], 1024  }
  0xf5   : > { %3050 = vsyncadd (%p3745_p7), [#allocation19], 4294966272  ;;  %v3091_v0 = vmov 0.0   ;;  %vm3092_vm0 = vmmov 0   ;;  %v2664_v1 = vld [vmem:[#allocation9] sm:$0xff]   ;;  %v2666_v3 = vld [vmem:[#allocation9 + $0x8] sm:$0xff]  }
  0xf6   : > { %2303 = vmatprep.subr.bf16.mxu0 %v3091_v0  ;;  %643 = vst [vmem:[#allocation2] sm:$0xff] %v3091_v0  ;;  %644 = vst [vmem:[#allocation3] sm:$0xff] %v3091_v0  ;;  %2323 = vmatprep.subr.bf16.mxu1 %v3091_v0  ;;  %v2665_v2 = vld [vmem:[#allocation9 + $0x40] sm:$0xff]   ;;  %v2667_v4 = vld [vmem:[#allocation9 + $0x48] sm:$0xff]   ;;  %s3746_s15 = sld [smem:[#allocation29_spill]]  ;;  %s3747_s24 = sld [smem:[#allocation30_spill]] }
  0xf7   : > { %1220 = vst [vmem:[#allocation4] sm:$0xff] %v3091_v0  ;;  %1221 = vst [vmem:[#allocation5] sm:$0xff] %v3091_v0  ;;  %2319 = vmatprep.mubr.msk.bf16.mxu0 %vm3092_vm0, %v3091_v0  ;;  %2339 = vmatprep.mubr.msk.bf16.mxu1 %vm3092_vm0, %v3091_v0  ;;  %v2668_v5 = vld [vmem:[#allocation9 + $0x10] sm:$0xff]   ;;  %v2670_v7 = vld [vmem:[#allocation9 + $0x18] sm:$0xff]   ;;  %s3748_s28 = sld [smem:[#allocation31_spill]]  ;;  %s3749_s17 = sld [smem:[#allocation32_spill]] }
  0xf8   : > { %2304 = vmatpush3.bf16.msra.mxu0 %v2664_v1  ;;  %2324 = vmatpush3.bf16.msra.mxu1 %v2665_v2  ;;  %v2669_v6 = vld [vmem:[#allocation9 + $0x50] sm:$0xff]   ;;  %v2671_v8 = vld [vmem:[#allocation9 + $0x58] sm:$0xff]   ;;  %v2672_v9 = vld [vmem:[#allocation9 + $0x20] sm:$0xff]   ;;  %s3750_s26 = sld [smem:[#allocation33_spill]]  ;;  %s3751_s10 = sld [smem:[#allocation34_spill]] }
  0xf9   : > { %2305 = vmatprep.subr.bf16.mxu0 %v3091_v0  ;;  %2325 = vmatprep.subr.bf16.mxu1 %v3091_v0  ;;  %v2673_v10 = vld [vmem:[#allocation9 + $0x60] sm:$0xff]   ;;  %v638_v12 = vld [vmem:[%s3486_s21 + $0x8] sm:$0xff]  ;;  %v2676_v15 = vld [vmem:[#allocation9 + $0x30] sm:$0xff]   ;;  %s632_s8 = scalar_lea.vmem [#allocation20], %s2093_s6  ;;  %s1909_s6 = scalar_lea.sflag [#allocation8], %s3480_s16 }
  0xfa   : > { %v637_v11 = vld [vmem:[%s3486_s21] sm:$0xff]  ;;  %646 = vst [vmem:[#allocation2 + $0x10] sm:$0xff] %v638_v12  ;;  %v2674_v13 = vld [vmem:[#allocation9 + $0x28] sm:$0xff]   ;;  %v2678_v17 = vld [vmem:[#allocation9 + $0x38] sm:$0xff]   ;;  %s1924_s1 = sshll.u32 %s632_s8, 4  ;;  %p3755_p5 = scmp.ne.s32.totalorder %s3741_s4, 0  ;;  %s3646_s1 = int_to_ptr.vmem [resolvable:$true] %s1924_s1 }
  0xfb   : > { %645 = vst [vmem:[#allocation2 + $0x8] sm:$0xff] %v637_v11  ;;  %v2675_v14 = vld [vmem:[#allocation9 + $0x68] sm:$0xff]   ;;  %v2677_v16 = vld [vmem:[#allocation9 + $0x70] sm:$0xff]   ;;  %v2679_v18 = vld [vmem:[#allocation9 + $0x78] sm:$0xff]   ;;  %v3534_v24 = vpack.c.bf16 %v638_v12, %v637_v11  ;;  %s2979_s2 = scalar_lea.vmem %s3646_s1, 256 }
  0xfc   : > { %2306 = vmatpush3.bf16.msra.mxu0 %v2666_v3  ;;  %2326 = vmatpush3.bf16.msra.mxu1 %v2667_v4  ;;  %v2682_v21 = vld [vmem:[#allocation11] sm:$0xff]   ;;  %v2684_v25 = vld [vmem:[#allocation11 + $0x8] sm:$0xff]   ;;  %v2686_v27 = vld [vmem:[#allocation11 + $0x10] sm:$0xff]   ;;  %p2980_p6 = scmp.ne.s32.totalorder %s3646_s1, %s2979_s2 }
  0xfd   : > { %2307 = vmatprep.subr.bf16.mxu0 %v3091_v0  ;;  %2327 = vmatprep.subr.bf16.mxu1 %v3091_v0  ;;  %v2680_v23 = vld [vmem:[#allocation11 + $0x40] sm:$0xff]   ;;  %v2681_v26 = vld [vmem:[#allocation11 + $0x48] sm:$0xff]   ;;  %v2683_v28 = vld [vmem:[#allocation11 + $0x50] sm:$0xff]  }
  0xfe   : > { %v2688_v29 = vld [vmem:[#allocation11 + $0x18] sm:$0xff]   ;;  %v2687_v31 = vld [vmem:[#allocation11 + $0x60] sm:$0xff]   ;;  %v2689_v32 = vld [vmem:[#allocation11 + $0x68] sm:$0xff]   ;;  %p2981_p10 = pnand %p2980_p6, %p3755_p5 }
  0xff   : > { %v2685_v30 = vld [vmem:[#allocation11 + $0x58] sm:$0xff]   ;;  %v2690_v33 = vld [vmem:[#allocation11 + $0x20] sm:$0xff]   ;;  %v2691_v34 = vld [vmem:[#allocation11 + $0x70] sm:$0xff]  }
 0x100   : > { %2308 = vmatpush3.bf16.msra.mxu0 %v2668_v5  ;;  %2328 = vmatpush3.bf16.msra.mxu1 %v2669_v6  ;;  %v2692_v35 = vld [vmem:[#allocation11 + $0x28] sm:$0xff]   ;;  %v2693_v36 = vld [vmem:[#allocation11 + $0x78] sm:$0xff]   ;;  %v2694_v37 = vld [vmem:[#allocation11 + $0x30] sm:$0xff]   ;;  %p2982_p11 = pneg %p2981_p10 }
 0x101   : > { %2309 = vmatprep.subr.bf16.mxu0 %v3091_v0  ;;  %2329 = vmatprep.subr.bf16.mxu1 %v3091_v0  ;;  %v2695_v38 = vld [vmem:[#allocation11 + $0x38] sm:$0xff]   ;;  %v2118_v41 = vld [vmem:[%s3746_s15] ss:$0 sm:$0xff]  ;;  %v2697_v59 = vld [vmem:[#allocation12 + $0x8] sm:$0xff]  }
 0x102   : > { %v664_v19 = vld [vmem:[#allocation2 + $0x7] sm:$0xff]  ;;  %v665_v20 = vld [vmem:[#allocation2 + $0xf] sm:$0xff]  ;;  %v2699_v61 = vld [vmem:[#allocation12 + $0x18] sm:$0xff]  }
 0x103   : > { %v666_v22 = vpack.c.bf16 %v665_v20, %v664_v19  ;;  %v2696_v57 = vld [vmem:[#allocation12] sm:$0xff]   ;;  %v2698_v60 = vld [vmem:[#allocation12 + $0x10] sm:$0xff]   ;;  %v2701_v63 = vld [vmem:[#allocation12 + $0x28] sm:$0xff]  }
 0x104   : > { %2310 = vmatpush3.bf16.msra.mxu0 %v2670_v7  ;;  %2330 = vmatpush3.bf16.msra.mxu1 %v2671_v8  ;;  %v2700_v62 = vld [vmem:[#allocation12 + $0x20] sm:$0xff]   ;;  %v2702_v1 = vld [vmem:[#allocation12 + $0x30] sm:$0xff]   ;;  %v2703_v2 = vld [vmem:[#allocation12 + $0x38] sm:$0xff]  }
 0x105   : > { %2311 = vmatprep.subr.bf16.mxu0 %v3091_v0  ;;  %2331 = vmatprep.subr.bf16.mxu1 %v3091_v0  ;;  %v2704_v3 = vld [vmem:[#allocation14 + $0x40] sm:$0xff]   ;;  %v2705_v5 = vld [vmem:[#allocation14 + $0x48] sm:$0xff]   ;;  %v2707_v7 = vld [vmem:[#allocation14 + $0x50] sm:$0xff]  }
 0x106   : > { %v2706_v4 = vld [vmem:[#allocation14] sm:$0xff]   ;;  %v2708_v6 = vld [vmem:[#allocation14 + $0x8] sm:$0xff]   ;;  %v2710_v8 = vld [vmem:[#allocation14 + $0x10] sm:$0xff]  }
 0x107   : > { %v2712_v11 = vld [vmem:[#allocation14 + $0x18] sm:$0xff]   ;;  %v2713_v12 = vld [vmem:[#allocation14 + $0x68] sm:$0xff]  }
 0x108   : > { %2312 = vmatpush3.bf16.msra.mxu0 %v2672_v9  ;;  %2332 = vmatpush3.bf16.msra.mxu1 %v2673_v10  ;;  %v2709_v9 = vld [vmem:[#allocation14 + $0x58] sm:$0xff]   ;;  %v2711_v10 = vld [vmem:[#allocation14 + $0x60] sm:$0xff]  }
 0x109   : > { %2313 = vmatprep.subr.bf16.mxu0 %v3091_v0  ;;  %2333 = vmatprep.subr.bf16.mxu1 %v3091_v0 }
 0x10c   : > { %2314 = vmatpush3.bf16.msra.mxu0 %v2674_v13  ;;  %2334 = vmatpush3.bf16.msra.mxu1 %v2675_v14  ;;  %v2714_v13 = vld [vmem:[#allocation14 + $0x20] sm:$0xff]   ;;  %v2715_v14 = vld [vmem:[#allocation14 + $0x70] sm:$0xff]  }
 0x10d   : > { %2315 = vmatprep.subr.bf16.mxu0 %v3091_v0  ;;  %2335 = vmatprep.subr.bf16.mxu1 %v3091_v0 }
 0x110   : > { %2316 = vmatpush3.bf16.msra.mxu0 %v2676_v15  ;;  %2336 = vmatpush3.bf16.msra.mxu1 %v2677_v16  ;;  %v2716_v15 = vld [vmem:[#allocation14 + $0x28] sm:$0xff]   ;;  %v2717_v16 = vld [vmem:[#allocation14 + $0x78] sm:$0xff]  }
 0x111   : > { %2317 = vmatprep.subr.bf16.mxu0 %v3091_v0  ;;  %2337 = vmatprep.subr.bf16.mxu1 %v3091_v0 }
 0x114   : > { %2318 = vmatpush3.bf16.msra.mxu0 %v2678_v17  ;;  %2338 = vmatpush3.bf16.msra.mxu1 %v2679_v18  ;;  %v2718_v17 = vld [vmem:[#allocation14 + $0x30] sm:$0xff]   ;;  %v2719_v18 = vld [vmem:[#allocation14 + $0x38] sm:$0xff]  }
 0x115   : > { %2343 = vmatprep.subr.bf16.mxu0 %v3091_v0  ;;  %2363 = vmatprep.subr.bf16.mxu1 %v3091_v0 }
 0x117   : > { %2320 = vmatmul.mubr.bf16.vlgmr.msra.gmra.mrb[0].mxu0 %v666_v22  ;;  %2340 = vmatmul.mubr.bf16.vlgmr.msra.gmra.mrb[0].mxu1 %v3534_v24 }
 0x118   : > { %2344 = vmatpush3.bf16.msra.mxu0 %v2682_v21  ;;  %2364 = vmatpush3.bf16.msra.mxu1 %v2680_v23 }
 0x119   : > { %2345 = vmatprep.subr.bf16.mxu0 %v3091_v0  ;;  %2365 = vmatprep.subr.bf16.mxu1 %v3091_v0 }
 0x11a   : > { %2379 = vmatprep.mubr.msk.bf16.mxu1 %vm3092_vm0, %v3091_v0  ;;  %2359 = vmatprep.mubr.msk.bf16.mxu0 %vm3092_vm0, %v3091_v0 }
 0x11c   : > { %2346 = vmatpush3.bf16.msra.mxu0 %v2684_v25  ;;  %2366 = vmatpush3.bf16.msra.mxu1 %v2681_v26 }
 0x11d   : > { %2347 = vmatprep.subr.bf16.mxu0 %v3091_v0  ;;  %2367 = vmatprep.subr.bf16.mxu1 %v3091_v0 }
 0x120   : > { %2348 = vmatpush3.bf16.msra.mxu0 %v2686_v27  ;;  %2368 = vmatpush3.bf16.msra.mxu1 %v2683_v28 }
 0x121   : > { %2349 = vmatprep.subr.bf16.mxu0 %v3091_v0  ;;  %2369 = vmatprep.subr.bf16.mxu1 %v3091_v0 }
 0x124   : > { %2350 = vmatpush3.bf16.msra.mxu0 %v2688_v29  ;;  %2370 = vmatpush3.bf16.msra.mxu1 %v2685_v30  ;;  %v2135_v29 = vld [vmem:[%s3747_s24] ss:$0 sm:$0xff]  ;;  %s3752_s24 = sld [smem:[#allocation27_spill]] }
 0x125   : > { %2351 = vmatprep.subr.bf16.mxu0 %v3091_v0  ;;  %2371 = vmatprep.subr.bf16.mxu1 %v3091_v0 }
 0x128   : > { %2372 = vmatpush3.bf16.msra.mxu1 %v2687_v31  ;;  %2352 = vmatpush3.bf16.msra.mxu0 %v2690_v33  ;;  %v2136_v31 = vld [vmem:[%s3748_s28] ss:$0 sm:$0xff]  ;;  %s3753_s28 = sld [smem:[#allocation35_spill]] }
 0x129   : > { %2373 = vmatprep.subr.bf16.mxu1 %v3091_v0  ;;  %2353 = vmatprep.subr.bf16.mxu0 %v3091_v0 }
 0x12c   : > { %2374 = vmatpush3.bf16.msra.mxu1 %v2689_v32  ;;  %2354 = vmatpush3.bf16.msra.mxu0 %v2692_v35 }
 0x12d   : > { %2375 = vmatprep.subr.bf16.mxu1 %v3091_v0  ;;  %2355 = vmatprep.subr.bf16.mxu0 %v3091_v0 }
 0x130   : > { %2376 = vmatpush3.bf16.msra.mxu1 %v2691_v34  ;;  %2356 = vmatpush3.bf16.msra.mxu0 %v2694_v37 }
 0x131   : > { %2377 = vmatprep.subr.bf16.mxu1 %v3091_v0  ;;  %2357 = vmatprep.subr.bf16.mxu0 %v3091_v0 }
 0x134   : > { %2378 = vmatpush3.bf16.msra.mxu1 %v2693_v36  ;;  %2358 = vmatpush3.bf16.msra.mxu0 %v2695_v38 }
 0x135   : > { %2403 = vmatprep.subr.bf16.mxu1 %v3091_v0  ;;  %2383 = vmatprep.subr.bf16.mxu0 %v3091_v0 }
 0x1ea   : > { %v765_v39 = vpop.f32.mrb[0].mxu0  ;;  %v854_v40 = vpop.f32.mrb[0].mxu1 }
 0x1eb   : > { %v2321_v42 = vpop.f32.mrb[1].mxu0  ;;  %v855_v43 = vadd.f32 %v854_v40, %v765_v39  ;;  %v2341_v44 = vpop.f32.mrb[1].mxu1 }
 0x1ec   : > { %v768_v45 = vpop.f32.mrb[2].mxu0  ;;  %v857_v46 = vpop.f32.mrb[2].mxu1 }
 0x1ed   : > { %v2322_v47 = vpop.f32.mrb[3].mxu0  ;;  %v868_v48 = vadd.f32 %v2118_v41, %v855_v43  ;;  %v858_v49 = vadd.f32 %v857_v46, %v768_v45  ;;  %v2342_v50 = vpop.f32.mrb[3].mxu1  ;;  %v2720_v45 = vld [vmem:[#allocation15 + $0x40] sm:$0xff]  }
 0x1ee   : > { %v2721_v47 = vld [vmem:[#allocation15 + $0x48] sm:$0xff]  }
 0x1ef   : > { %v870_v51 = vmax.f32 %v868_v48, 0.0  ;;  %v869_v52 = vadd.f32 %v2118_v41, %v858_v49  ;;  %v2722_v48 = vld [vmem:[#allocation15] sm:$0xff]  }
 0x1f1   : > { %873 = vst [vmem:[#allocation3 + $0x8] sm:$0xff] %v870_v51  ;;  %v871_v53 = vmax.f32 %v869_v52, 0.0 }
 0x1f3   : > { %v872_v54 = vpack.c.bf16 %v871_v53, %v870_v51  ;;  %874 = vst [vmem:[#allocation3 + $0x10] sm:$0xff] %v871_v53  ;;  %v2723_v51 = vld [vmem:[#allocation15 + $0x50] sm:$0xff]   ;;  %v2724_v53 = vld [vmem:[#allocation15 + $0x8] sm:$0xff]  }
 0x1f5   : > { %2380 = vmatmul.mubr.bf16.vlgmr.msra.gmra.mrb[4].mxu1 %v872_v54  ;;  %v2725_v54 = vld [vmem:[#allocation15 + $0x58] sm:$0xff]  }
 0x1f6   : > { %2419 = vmatprep.mubr.msk.bf16.mxu1 %vm3092_vm0, %v3091_v0  ;;  %2404 = vmatpush3.bf16.msra.mxu1 %v2706_v4 }
 0x1f7   : > { %2405 = vmatprep.subr.bf16.mxu1 %v3091_v0 }
 0x1f8   : > { %v892_v55 = vld [vmem:[#allocation3 + $0x7] sm:$0xff] }
 0x1fa   : > { %v893_v56 = vld [vmem:[#allocation3 + $0xf] sm:$0xff]  ;;  %2406 = vmatpush3.bf16.msra.mxu1 %v2708_v6 }
 0x1fb   : > { %v894_v58 = vpack.c.bf16 %v893_v56, %v892_v55  ;;  %2407 = vmatprep.subr.bf16.mxu1 %v3091_v0  ;;  %v2726_v55 = vld [vmem:[#allocation15 + $0x10] sm:$0xff]   ;;  %v2727_v56 = vld [vmem:[#allocation15 + $0x60] sm:$0xff]  }
 0x1fd   : > { %2360 = vmatmul.mubr.bf16.vlgmr.msra.gmra.mrb[4].mxu0 %v894_v58  ;;  %v2729_v58 = vld [vmem:[#allocation15 + $0x68] sm:$0xff]  }
 0x1fe   : > { %2384 = vmatpush3.bf16.msra.mxu0 %v2696_v57  ;;  %2399 = vmatprep.mubr.msk.bf16.mxu0 %vm3092_vm0, %v3091_v0  ;;  %v2728_v57 = vld [vmem:[#allocation15 + $0x18] sm:$0xff]  }
 0x1ff   : > { %2385 = vmatprep.subr.bf16.mxu0 %v3091_v0  ;;  %2408 = vmatpush3.bf16.msra.mxu1 %v2710_v8 }
 0x200   : > { %2409 = vmatprep.subr.bf16.mxu1 %v3091_v0 }
 0x202   : > { %2386 = vmatpush3.bf16.msra.mxu0 %v2697_v59  ;;  %v2730_v59 = vld [vmem:[#allocation15 + $0x20] sm:$0xff]  }
 0x203   : > { %2387 = vmatprep.subr.bf16.mxu0 %v3091_v0  ;;  %2410 = vmatpush3.bf16.msra.mxu1 %v2712_v11 }
 0x204   : > { %2411 = vmatprep.subr.bf16.mxu1 %v3091_v0 }
 0x206   : > { %2388 = vmatpush3.bf16.msra.mxu0 %v2698_v60  ;;  %v2731_v60 = vld [vmem:[#allocation15 + $0x70] sm:$0xff]  }
 0x207   : > { %2389 = vmatprep.subr.bf16.mxu0 %v3091_v0  ;;  %2412 = vmatpush3.bf16.msra.mxu1 %v2714_v13 }
 0x208   : > { %2413 = vmatprep.subr.bf16.mxu1 %v3091_v0 }
 0x20a   : > { %2390 = vmatpush3.bf16.msra.mxu0 %v2699_v61  ;;  %v2732_v61 = vld [vmem:[#allocation15 + $0x28] sm:$0xff]  }
 0x20b   : > { %2391 = vmatprep.subr.bf16.mxu0 %v3091_v0  ;;  %2414 = vmatpush3.bf16.msra.mxu1 %v2716_v15 }
 0x20c   : > { %2415 = vmatprep.subr.bf16.mxu1 %v3091_v0 }
 0x20e   : > { %2392 = vmatpush3.bf16.msra.mxu0 %v2700_v62  ;;  %v2733_v62 = vld [vmem:[#allocation15 + $0x78] sm:$0xff]  }
 0x20f   : > { %2393 = vmatprep.subr.bf16.mxu0 %v3091_v0  ;;  %2416 = vmatpush3.bf16.msra.mxu1 %v2718_v17 }
 0x210   : > { %2417 = vmatprep.subr.bf16.mxu1 %v3091_v0 }
 0x212   : > { %2394 = vmatpush3.bf16.msra.mxu0 %v2701_v63  ;;  %v2734_v63 = vld [vmem:[#allocation15 + $0x30] sm:$0xff]  }
 0x213   : > { %2395 = vmatprep.subr.bf16.mxu0 %v3091_v0  ;;  %2418 = vmatpush3.bf16.msra.mxu1 %v2719_v18 }
 0x214   : > { %2443 = vmatprep.subr.bf16.mxu1 %v3091_v0 }
 0x216   : > { %2396 = vmatpush3.bf16.msra.mxu0 %v2702_v1  ;;  %v2735_v1 = vld [vmem:[#allocation15 + $0x38] sm:$0xff]  }
 0x217   : > { %2397 = vmatprep.subr.bf16.mxu0 %v3091_v0 }
 0x21a   : > { %2398 = vmatpush3.bf16.msra.mxu0 %v2703_v2 }
 0x21b   : > { %2423 = vmatprep.subr.bf16.mxu0 %v3091_v0 }
 0x21d   : > { %2400 = vmatmul.mubr.bf16.vlgmr.msra.gmra.mrb[8].mxu0 %v3534_v24 }
 0x21e   : > { %2439 = vmatprep.mubr.msk.bf16.mxu0 %vm3092_vm0, %v3091_v0  ;;  %2424 = vmatpush3.bf16.msra.mxu0 %v2704_v3 }
 0x21f   : > { %2425 = vmatprep.subr.bf16.mxu0 %v3091_v0 }
 0x222   : > { %2426 = vmatpush3.bf16.msra.mxu0 %v2705_v5 }
 0x223   : > { %2427 = vmatprep.subr.bf16.mxu0 %v3091_v0 }
 0x226   : > { %2428 = vmatpush3.bf16.msra.mxu0 %v2707_v7  ;;  %v2161_v7 = vld [vmem:[%s3749_s17] ss:$0 sm:$0xff]  ;;  %s2203_s17 = sshll.u32 %s3752_s24, 8 }
 0x227   : > { %2429 = vmatprep.subr.bf16.mxu0 %v3091_v0 }
 0x22a   : > { %2430 = vmatpush3.bf16.msra.mxu0 %v2709_v9 }
 0x22b   : > { %2431 = vmatprep.subr.bf16.mxu0 %v3091_v0 }
 0x22e   : > { %2432 = vmatpush3.bf16.msra.mxu0 %v2711_v10 }
 0x22f   : > { %2433 = vmatprep.subr.bf16.mxu0 %v3091_v0 }
 0x232   : > { %2434 = vmatpush3.bf16.msra.mxu0 %v2713_v12 }
 0x233   : > { %2435 = vmatprep.subr.bf16.mxu0 %v3091_v0 }
 0x236   : > { %2436 = vmatpush3.bf16.msra.mxu0 %v2715_v14 }
 0x237   : > { %2437 = vmatprep.subr.bf16.mxu0 %v3091_v0 }
 0x23a   : > { %2438 = vmatpush3.bf16.msra.mxu0 %v2717_v16 }
 0x23b   : > { %2463 = vmatprep.subr.bf16.mxu0 %v3091_v0 }
 0x2c8   : > { %v1082_v19 = vpop.f32.mrb[4].mxu1 }
 0x2c9   : > { %v2381_v20 = vpop.f32.mrb[5].mxu1 }
 0x2ca   : > { %v1085_v21 = vpop.f32.mrb[6].mxu1  ;;  %v2736_v20 = vld [vmem:[#allocation17] sm:$0xff]  }
 0x2cb   : > { %v2382_v22 = vpop.f32.mrb[7].mxu1 }
 0x2cc   : > { %v2737_v22 = vld [vmem:[#allocation17 + $0x8] sm:$0xff]  }
 0x2d0   : > { %v993_v23 = vpop.f32.mrb[4].mxu0 }
 0x2d1   : > { %v1083_v24 = vadd.f32 %v1082_v19, %v993_v23  ;;  %v2361_v25 = vpop.f32.mrb[5].mxu0  ;;  %v2738_v23 = vld [vmem:[#allocation17 + $0x10] sm:$0xff]  }
 0x2d2   : > { %v996_v26 = vpop.f32.mrb[6].mxu0  ;;  %v2740_v25 = vld [vmem:[#allocation17 + $0x20] sm:$0xff]  }
 0x2d3   : > { %v1086_v27 = vadd.f32 %v1085_v21, %v996_v26  ;;  %v2362_v28 = vpop.f32.mrb[7].mxu0  ;;  %v1096_v30 = vadd.f32 %v2135_v29, %v1083_v24  ;;  %v2739_v24 = vld [vmem:[#allocation17 + $0x18] sm:$0xff]   ;;  %v2741_v26 = vld [vmem:[#allocation17 + $0x28] sm:$0xff]  }
 0x2d4   : > { %v2742_v28 = vld [vmem:[#allocation17 + $0x30] sm:$0xff]  }
 0x2d5   : > { %v1097_v32 = vadd.f32 %v2135_v29, %v1086_v27  ;;  %v1098_v34 = vmax.f32 %v1096_v30, 0.0  ;;  %v2752_v27 = vld [vmem:[#allocation2] sm:$0xff]  ;;  %v2743_v29 = vld [vmem:[#allocation17 + $0x38] sm:$0xff]  }
 0x2d6   : > { %v2744_v30 = vld [vmem:[#allocation18] sm:$0xff]  }
 0x2d7   : > { %v1099_v38 = vmax.f32 %v1097_v32, 0.0  ;;  %v2746_v32 = vld [vmem:[#allocation18 + $0x10] sm:$0xff]  }
 0x2f0   : > { %v1205_v33 = vpop.f32.mrb[8].mxu0 }
 0x2f1   : > { %v1206_v35 = vadd.f32 %v2136_v31, %v1205_v33  ;;  %v2401_v36 = vpop.f32.mrb[9].mxu0  ;;  %v2748_v33 = vld [vmem:[#allocation18 + $0x20] sm:$0xff]  }
 0x2f2   : > { %v1208_v37 = vpop.f32.mrb[10].mxu0  ;;  %v2751_v36 = vld [vmem:[#allocation18 + $0x38] sm:$0xff]  }
 0x2f3   : > { %v1212_v39 = vadd.f32 %v1206_v35, %v1098_v34  ;;  %v1209_v40 = vadd.f32 %v2136_v31, %v1208_v37  ;;  %v2402_v41 = vpop.f32.mrb[11].mxu0  ;;  %v2745_v31 = vld [vmem:[#allocation18 + $0x8] sm:$0xff]   ;;  %v2750_v35 = vld [vmem:[#allocation18 + $0x30] sm:$0xff]  }
 0x2f4   : > { %v2749_v34 = vld [vmem:[#allocation18 + $0x28] sm:$0xff]  }
 0x2f5   : > { %v1214_v42 = vmax.f32 %v1212_v39, 0.0  ;;  %v1213_v43 = vadd.f32 %v1209_v40, %v1099_v38 }
 0x2f7   : > { %1222 = vst [vmem:[#allocation4 + $0x8] sm:$0xff] %v1214_v42  ;;  %v1215_v44 = vmax.f32 %v1213_v43, 0.0 }
 0x2f9   : > { %v3599_v46 = vpack.c.bf16 %v1215_v44, %v1214_v42  ;;  %1223 = vst [vmem:[#allocation4 + $0x10] sm:$0xff] %v1215_v44 }
 0x2fb   : > { %2440 = vmatmul.mubr.bf16.vlgmr.msra.gmra.mrb[12].mxu0 %v3599_v46 }
 0x2fc   : > { %2464 = vmatpush3.bf16.msra.mxu0 %v2720_v45  ;;  %2479 = vmatprep.mubr.msk.bf16.mxu0 %vm3092_vm0, %v3091_v0 }
 0x2fd   : > { %2465 = vmatprep.subr.bf16.mxu0 %v3091_v0 }
 0x2fe   : > { %v1241_v49 = vld [vmem:[#allocation4 + $0x6] sm:$0xff] }
 0x300   : > { %v1242_v50 = vld [vmem:[#allocation4 + $0xe] sm:$0xff]  ;;  %2466 = vmatpush3.bf16.msra.mxu0 %v2721_v47 }
 0x301   : > { %v1243_v52 = vpack.c.bf16 %v1242_v50, %v1241_v49  ;;  %2467 = vmatprep.subr.bf16.mxu0 %v3091_v0  ;;  %v2178_v47 = vld [vmem:[%s3750_s26] ss:$0 sm:$0xff]  ;;  %s3754_s26 = sld [smem:[#allocation36_spill]] }
 0x302   : > { %v2179_v49 = vld [vmem:[%s3751_s10] ss:$0 sm:$0xff]  ;;  %s3093_s10 = smov [#allocation20]  }
 0x303   : > { %2420 = vmatmul.mubr.bf16.vlgmr.msra.gmra.mrb[8].mxu1 %v1243_v52  ;;  %s2983_s24 = sshll.u32 %s3093_s10, 4  ;;  %s2984_s24 = int_to_ptr.vmem [resolvable:$false] %s2983_s24 }
 0x304   : > { %2444 = vmatpush3.bf16.msra.mxu1 %v2722_v48  ;;  %2468 = vmatpush3.bf16.msra.mxu0 %v2723_v51  ;;  %s2985_s14 = scalar_lea.vmem %s2984_s24, 512  ;;  %p2986_p2 = scmp.lt.s32.totalorder %s3646_s1, %s2984_s24 }
 0x305   : > { %2445 = vmatprep.subr.bf16.mxu1 %v3091_v0  ;;  %2469 = vmatprep.subr.bf16.mxu0 %v3091_v0  ;;  %p2987_p4 = scmp.lt.s32.totalorder %s2985_s14, %s2979_s2 }
 0x306   : > { %2459 = vmatprep.mubr.msk.bf16.mxu1 %vm3092_vm0, %v3091_v0 }
 0x307   : > { %s3651_s15 = scalar_lea.hbm %s3754_s26, %s2203_s17  ;;  %p2988_p9 = por %p2987_p4, %p2986_p2 }
 0x308   : > { %2446 = vmatpush3.bf16.msra.mxu1 %v2724_v53  ;;  %2470 = vmatpush3.bf16.msra.mxu0 %v2725_v54 }
 0x309   : > { %2447 = vmatprep.subr.bf16.mxu1 %v3091_v0  ;;  %2471 = vmatprep.subr.bf16.mxu0 %v3091_v0  ;;  %p2989_p8 = pnand %p2988_p9, %p2982_p11 }
 0x30c   : > { %2448 = vmatpush3.bf16.msra.mxu1 %v2726_v55  ;;  %2472 = vmatpush3.bf16.msra.mxu0 %v2727_v56 }
 0x30d   : > { %2449 = vmatprep.subr.bf16.mxu1 %v3091_v0  ;;  %2473 = vmatprep.subr.bf16.mxu0 %v3091_v0 }
 0x310   : > { %2450 = vmatpush3.bf16.msra.mxu1 %v2728_v57  ;;  %2474 = vmatpush3.bf16.msra.mxu0 %v2729_v58 }
 0x311   : > { %2451 = vmatprep.subr.bf16.mxu1 %v3091_v0  ;;  %2475 = vmatprep.subr.bf16.mxu0 %v3091_v0 }
 0x314   : > { %2452 = vmatpush3.bf16.msra.mxu1 %v2730_v59  ;;  %2476 = vmatpush3.bf16.msra.mxu0 %v2731_v60 }
 0x315   : > { %2453 = vmatprep.subr.bf16.mxu1 %v3091_v0  ;;  %2477 = vmatprep.subr.bf16.mxu0 %v3091_v0 }
 0x318   : > { %2454 = vmatpush3.bf16.msra.mxu1 %v2732_v61  ;;  %2478 = vmatpush3.bf16.msra.mxu0 %v2733_v62 }
 0x319   : > { %2455 = vmatprep.subr.bf16.mxu1 %v3091_v0  ;;  %2503 = vmatprep.subr.bf16.mxu0 %v3091_v0 }
 0x31c   : > { %2456 = vmatpush3.bf16.msra.mxu1 %v2734_v63 }
 0x31d   : > { %2457 = vmatprep.subr.bf16.mxu1 %v3091_v0 }
 0x320   : > { %2458 = vmatpush3.bf16.msra.mxu1 %v2735_v1  ;;  %v2188_v1 = vld [vmem:[%s3753_s28] ss:$0 sm:$0xff] }
 0x321   : > { %2483 = vmatprep.subr.bf16.mxu1 %v3091_v0 }
 0x3ce   : > { %v1431_v2 = vpop.f32.mrb[12].mxu0 }
 0x3cf   : > { %v2441_v3 = vpop.f32.mrb[13].mxu0 }
 0x3d0   : > { %v1434_v4 = vpop.f32.mrb[14].mxu0 }
 0x3d1   : > { %v2442_v5 = vpop.f32.mrb[15].mxu0 }
 0x3d6   : > { %v1342_v6 = vpop.f32.mrb[8].mxu1 }
 0x3d7   : > { %v1432_v8 = vadd.f32 %v1431_v2, %v1342_v6  ;;  %v2421_v9 = vpop.f32.mrb[9].mxu1 }
 0x3d8   : > { %v1345_v10 = vpop.f32.mrb[10].mxu1 }
 0x3d9   : > { %v1445_v11 = vadd.f32 %v2161_v7, %v1432_v8  ;;  %v1435_v12 = vadd.f32 %v1434_v4, %v1345_v10  ;;  %v2422_v13 = vpop.f32.mrb[11].mxu1 }
 0x3db   : > { %v1447_v14 = vmax.f32 %v1445_v11, 0.0  ;;  %v1446_v15 = vadd.f32 %v2161_v7, %v1435_v12 }
 0x3dd   : > { %1450 = vst [vmem:[#allocation5 + $0x8] sm:$0xff] %v1447_v14  ;;  %v1448_v16 = vmax.f32 %v1446_v15, 0.0 }
 0x3df   : > { %v1449_v17 = vpack.c.bf16 %v1448_v16, %v1447_v14  ;;  %1451 = vst [vmem:[#allocation5 + $0x10] sm:$0xff] %v1448_v16 }
 0x3e1   : > { %2480 = vmatmul.mubr.bf16.vlgmr.msra.gmra.mrb[16].mxu0 %v1449_v17 }
 0x3e2   : > { %2519 = vmatprep.mubr.msk.bf16.mxu0 %vm3092_vm0, %v3091_v0  ;;  %2504 = vmatpush3.bf16.msra.mxu0 %v2744_v30 }
 0x3e3   : > { %2505 = vmatprep.subr.bf16.mxu0 %v2752_v27 }
 0x3e4   : > { %v1469_v18 = vld [vmem:[#allocation5 + $0x6] sm:$0xff] }
 0x3e6   : > { %v1470_v19 = vld [vmem:[#allocation5 + $0xe] sm:$0xff]  ;;  %2506 = vmatpush3.bf16.msra.mxu0 %v2745_v31 }
 0x3e7   : > { %v1471_v21 = vpack.c.bf16 %v1470_v19, %v1469_v18  ;;  %2507 = vmatprep.subr.bf16.mxu0 %v2752_v27 }
 0x3e9   : > { %2460 = vmatmul.mubr.bf16.vlgmr.msra.gmra.mrb[12].mxu1 %v1471_v21 }
 0x3ea   : > { %2484 = vmatpush3.bf16.msra.mxu1 %v2736_v20  ;;  %2499 = vmatprep.mubr.msk.bf16.mxu1 %vm3092_vm0, %v3091_v0 }
 0x3eb   : > { %2485 = vmatprep.subr.bf16.mxu1 %v3091_v0  ;;  %2508 = vmatpush3.bf16.msra.mxu0 %v2746_v32 }
 0x3ec   : > { %2509 = vmatprep.subr.bf16.mxu0 %v2752_v27 }
 0x3ee   : > { %2486 = vmatpush3.bf16.msra.mxu1 %v2737_v22 }
 0x3ef   : > { %2487 = vmatprep.subr.bf16.mxu1 %v3091_v0 }
 0x3f2   : > { %2488 = vmatpush3.bf16.msra.mxu1 %v2738_v23 }
 0x3f3   : > { %2489 = vmatprep.subr.bf16.mxu1 %v3091_v0 }
 0x3f6   : > { %2490 = vmatpush3.bf16.msra.mxu1 %v2739_v24 }
 0x3f7   : > { %2491 = vmatprep.subr.bf16.mxu1 %v3091_v0  ;;  %v2747_v0 = vld [vmem:[#allocation18 + $0x18] sm:$0xff]  }
 0x3f8   : > { %2510 = vmatpush3.bf16.msra.mxu0 %v2747_v0 }
 0x3f9   : > { %2511 = vmatprep.subr.bf16.mxu0 %v2752_v27 }
 0x3fa   : > { %2492 = vmatpush3.bf16.msra.mxu1 %v2740_v25 }
 0x3fb   : > { %2493 = vmatprep.subr.bf16.mxu1 %v2752_v27 }
 0x3fc   : > { %2512 = vmatpush3.bf16.msra.mxu0 %v2748_v33 }
 0x3fd   : > { %2513 = vmatprep.subr.bf16.mxu0 %v2752_v27 }
 0x3fe   : > { %2494 = vmatpush3.bf16.msra.mxu1 %v2741_v26 }
 0x3ff   : > { %2495 = vmatprep.subr.bf16.mxu1 %v2752_v27 }
 0x400   : > { %2514 = vmatpush3.bf16.msra.mxu0 %v2749_v34 }
 0x401   : > { %2515 = vmatprep.subr.bf16.mxu0 %v2752_v27 }
 0x402   : > { %2496 = vmatpush3.bf16.msra.mxu1 %v2742_v28 }
 0x403   : > { %2497 = vmatprep.subr.bf16.mxu1 %v2752_v27 }
 0x404   : > { %2516 = vmatpush3.bf16.msra.mxu0 %v2750_v35 }
 0x405   : > { %2517 = vmatprep.subr.bf16.mxu0 %v2752_v27 }
 0x406   : > { %2498 = vmatpush3.bf16.msra.mxu1 %v2743_v29 }
 0x408   : > { %2518 = vmatpush3.bf16.msra.mxu0 %v2751_v36 }
 0x409   : > { %2500 = vmatmul.mubr.bf16.vlgmr.msra.gmra.mrb[16].mxu1 %v3599_v46 }
 0x4b4   : > { %v1659_v37 = vpop.f32.mrb[16].mxu0 }
 0x4b5   : > { %v2481_v38 = vpop.f32.mrb[17].mxu0 }
 0x4b6   : > { %v1662_v39 = vpop.f32.mrb[18].mxu0 }
 0x4b7   : > { %v2482_v40 = vpop.f32.mrb[19].mxu0 }
 0x4bc   : > { %v1570_v41 = vpop.f32.mrb[12].mxu1 }
 0x4bd   : > { %v1660_v42 = vadd.f32 %v1659_v37, %v1570_v41  ;;  %v2461_v43 = vpop.f32.mrb[13].mxu1 }
 0x4be   : > { %v1573_v44 = vpop.f32.mrb[14].mxu1 }
 0x4bf   : > { %v1663_v45 = vadd.f32 %v1662_v39, %v1573_v44  ;;  %v2462_v46 = vpop.f32.mrb[15].mxu1  ;;  %v1673_v48 = vadd.f32 %v2178_v47, %v1660_v42 }
 0x4c1   : > { %v1674_v50 = vadd.f32 %v2178_v47, %v1663_v45  ;;  %v1675_v52 = vmax.f32 %v1673_v48, 0.0 }
 0x4c3   : > { %v1676_v56 = vmax.f32 %v1674_v50, 0.0 }
 0x4dc   : > { %v1782_v51 = vpop.f32.mrb[16].mxu1 }
 0x4dd   : > { %v1783_v53 = vadd.f32 %v2179_v49, %v1782_v51  ;;  %v2501_v54 = vpop.f32.mrb[17].mxu1 }
 0x4de   : > { %v1785_v55 = vpop.f32.mrb[18].mxu1 }
 0x4df   : > { %v1789_v57 = vadd.f32 %v1783_v53, %v1675_v52  ;;  %v1786_v58 = vadd.f32 %v2179_v49, %v1785_v55  ;;  %v2502_v59 = vpop.f32.mrb[19].mxu1 }
 0x4e1   : > { %v1790_v60 = vadd.f32 %v1786_v58, %v1676_v56  ;;  %v1791_v61 = vmax.f32 %v1789_v57, 0.0 }
 0x4e3   : > { %v1792_v62 = vmax.f32 %v1790_v60, 0.0 }
 0x4e5   : > { %v1793_v63 = vpack.c.bf16 %v1792_v62, %v1791_v61 }
 0x4e7   : > { %2520 = vmatmul.mubr.bf16.vlgmr.msra.gmra.mrb[20].mxu0 %v1793_v63 }
 0x5ba   : > { %v1899_v2 = vpop.f32.mrb[20].mxu0 }
 0x5bb   : > { %v1900_v3 = vadd.f32 %v2188_v1, %v1899_v2  ;;  %v2521_v4 = vpop.f32.mrb[21].mxu0 }
 0x5bc   : > { %v1902_v5 = vpop.f32.mrb[22].mxu0 }
 0x5bd   : > { %1906 = vst [vmem:[%s632_s8] sm:$0xff] %v1900_v3  ;;  %v1903_v6 = vadd.f32 %v2188_v1, %v1902_v5  ;;  %v2522_v7 = vpop.f32.mrb[23].mxu0 }
 0x5bf   : > { %1907 = vst [vmem:[%s632_s8 + $0x8] sm:$0xff] %v1903_v6 }
 0x5c0   : > { %2992 = shalt.err (!%p2989_p8)
}
 0x5c1   : > { %s2993_s12 = scalar_lea.hbm %s3651_s15, 256  ;;  %s2997_s17 = scalar_lea.hbm %s3754_s26, 512 }
 0x5c2   : > { %p2994_p3 = scmp.ne.s32.totalorder %s3651_s15, %s2993_s12  ;;  %p2998_p0 = scmp.lt.u32.totalorder %s3651_s15, %s3754_s26 }
 0x5c3   : > { %p2999_p1 = scmp.lt.u32.totalorder %s2997_s17, %s2993_s12  ;;  %p3001_p6 = scmp.lt.u32.totalorder %s2993_s12, %s3651_s15 }
 0x5c4   : > { %p2995_p12 = pnand %p2994_p3, %p3755_p5 }
 0x5c5   : > { %p3000_p7 = por %p2999_p1, %p2998_p0 }
 0x5c6   : > { %p2996_p13 = pneg %p2995_p12 }
 0x5c7   : > { %p3002_p10 = por %p3001_p6, %p3000_p7 }
 0x5c9   : > { %p3003_p11 = pnand %p3002_p10, %p2996_p13 }
 0x5cb   : > { %3006 = shalt.err (!%p3003_p11)
}
 0x5cc   : > { %s3094_s2 = smov 128   ;;  %s3095_s10 = smov 8  }
 0x5cd   : > { %2553 = dma.vmem_to_hbm [thread:$0]  (%p3755_p5), %s3646_s1, 256, %s3651_s15, %s1909_s6, %s3094_s2, %s3094_s2, %s3095_s10  }
 0x5ce PF: > { %s1939_s24 = sand.u32 1, %s3057_s18   ;;  %p3756_p2 = scmp.ne.s32.totalorder %s3742_s30, 0 }
 0x5cf   : > { %p3757_p4 = scmp.ge.s32.totalorder %s3077_s23, 2  ;;  %s1940_s14 = scalar_lea.sflag [#allocation8], %s1939_s24 }
 0x5d1   : > { %p2582_p9 = pnand %p3757_p4, %p3756_p2 }
 0x5d3   : > { %3052 = dma.done.wait (!%p2582_p9), %s1940_s14, 256  }
 0x5d4   : > { %3054 = vsyncadd (!%p2582_p9), %s1940_s14, 4294967040  ;;  %s35_s23 = sadd.s32 1, %s3077_s23   ;;  %s3758_s18 = smov %s3061_s19 }
 0x5d5   : > { %p32_p8 = scmp.ge.s32.totalorder %s35_s23, 4   ;;  %s3759_s19 = smov %s3065_s20 }
 0x5d6   : > { %s3760_s20 = smov %s3428_s27  ;;  %s3761_s21 = smov %s3073_s22 }
 0x5d7   : > { %s3762_s22 = smov %s3764_s29  ;;  %34 = sbr.rel (!%p32_p8) target bundleno = 20 (0x14), region = 165 }
 0x5de   :  { %1945 = vsyncpa [#allocation7], 1 }
 0x5df   :  { %1947 = vsyncpa [#allocation7 + $0x1], 1 }
 0x5e0   :  { %1948 = vsyncpa [#allocation10], 1 }
 0x5e1   :  { %1949 = vsyncpa [#allocation13], 1 }
 0x5e2   :  { %1950 = vsyncpa [#allocation16], 1 }
 0x5e3   :  { %1951 = vsyncpa [#allocation19], 1 }
 0x5e4   :  { %1952 = vsyncpa [#allocation8], 1 }
 0x5e5   :  { %1954 = vsyncpa [#allocation8 + $0x1], 1 }

</bundles_post_ra>
